<compile_context>
chip_gen: v6e
topology: v6e:2x2x1
jax: 0.10.0
libtpu: 0.0.40
codegen_flags: <defaults>
</compile_context>

<pallas_src>
import functools

import jax
import jax.numpy as jnp
from jax.experimental import pallas as pl
from jax.experimental.pallas import tpu as pltpu


def _layernorm(x, gamma, beta, eps=1e-5):
    # x: (S, D) f32, gamma/beta: (1, D) f32. Single-pass stats: var = E[x^2] - mean^2.
    mu = jnp.mean(x, axis=-1, keepdims=True)
    msq = jnp.mean(x * x, axis=-1, keepdims=True)
    var = msq - mu * mu
    return (x - mu) * jax.lax.rsqrt(var + eps) * gamma + beta


def _gelu(x, approximate=False):
    if approximate:
        # tanh form -> EUP slot; gate behind a flag (accuracy tradeoff vs nn.GELU()).
        c = 0.7978845608028654  # sqrt(2/pi)
        return 0.5 * x * (1.0 + jnp.tanh(c * (x + 0.044715 * x * x * x)))
    # exact (erf) GELU, matching nn.GELU() default
    return 0.5 * x * (1.0 + jax.lax.erf(x * 0.7071067811865476))


def roberta_layer_kernel(num_heads, apply_final_ln, approx_gelu,
                         h_ref,
                         ln1_g_ref, ln1_b_ref,
                         wq_ref, bq_ref, wk_ref, bk_ref, wv_ref, bv_ref,
                         wo_ref, bo_ref,
                         ln2_g_ref, ln2_b_ref,
                         w1_ref, b1_ref, w2_ref, b2_ref,
                         *rest):
    if apply_final_ln:
        fin_g_ref, fin_b_ref = rest[0], rest[1]
        o_ref, h_sc, x_sc, acc_sc = rest[2:]
    else:
        o_ref, h_sc, x_sc, acc_sc = rest

    i = pl.program_id(1)
    n_i = pl.num_programs(1)
    cdt = w1_ref.dtype  # compute dtype for MXU inputs (bf16 by default)

    # ---- self-attention block (pre-LN) + scratch init: once per batch element ----
    @pl.when(i == 0)
    def _attention_and_init():
        h = h_ref[0].astype(jnp.float32)                    # (S, H) residual stream in f32
        S, H = h.shape
        hd = H // num_heads
        scale = 1.0 / (hd ** 0.5)

        x = _layernorm(h, ln1_g_ref[...], ln1_b_ref[...]).astype(cdt)
        q = jnp.dot(x, wq_ref[...], preferred_element_type=jnp.float32) + bq_ref[...]
        k = jnp.dot(x, wk_ref[...], preferred_element_type=jnp.float32) + bk_ref[...]
        v = jnp.dot(x, wv_ref[...], preferred_element_type=jnp.float32) + bv_ref[...]

        # (num_heads, S, hd): lane slices stacked on a new leading (major) axis.
        qh = jnp.stack([q[:, hj * hd:(hj + 1) * hd] for hj in range(num_heads)], axis=0).astype(cdt)
        kh = jnp.stack([k[:, hj * hd:(hj + 1) * hd] for hj in range(num_heads)], axis=0).astype(cdt)
        vh = jnp.stack([v[:, hj * hd:(hj + 1) * hd] for hj in range(num_heads)], axis=0).astype(cdt)

        # batched QK^T, softmax (f32 stats, EUP reciprocal), batched PV
        scores = jnp.einsum('hqd,hkd->hqk', qh, kh,
                            preferred_element_type=jnp.float32) * scale      # (nh, S, S)
        m = jnp.max(scores, axis=-1, keepdims=True)
        p = jnp.exp(scores - m)
        denom = jnp.sum(p, axis=-1, keepdims=True)
        p = p * pl.reciprocal(denom, approx=True)
        ctx = jnp.einsum('hqk,hkd->hqd', p.astype(cdt), vh,
                         preferred_element_type=jnp.float32)                 # (nh, S, hd)

        # output projection: accumulate per-head slab of Wo (no concatenate)
        attn = jnp.zeros((S, H), jnp.float32)
        for hj in range(num_heads):
            attn = attn + jnp.dot(ctx[hj].astype(cdt),
                                  wo_ref[hj * hd:(hj + 1) * hd, :],
                                  preferred_element_type=jnp.float32)
        attn = attn + bo_ref[...]

        h_attn = h + attn                      # attention_dropout == identity at inference
        h_sc[...] = h_attn
        x_sc[...] = _layernorm(h_attn, ln2_g_ref[...], ln2_b_ref[...]).astype(cdt)
        acc_sc[...] = jnp.zeros_like(acc_sc)

    # ---- FFN partial for this intermediate-dim tile (pre-LN, accumulated over i) ----
    y = jnp.dot(x_sc[...], w1_ref[...], preferred_element_type=jnp.float32) + b1_ref[...]
    y = _gelu(y, approx_gelu)
    acc_sc[...] += jnp.dot(y.astype(cdt), w2_ref[...], preferred_element_type=jnp.float32)

    # ---- finalize: residual add (+b2), optional fused final LayerNorm, store ----
    @pl.when(i == n_i - 1)
    def _finalize():
        out = h_sc[...] + acc_sc[...] + b2_ref[...]
        if apply_final_ln:
            out = _layernorm(out, fin_g_ref[...], fin_b_ref[...])
        o_ref[0] = out.astype(o_ref.dtype)


def final_ln_kernel(h_ref, g_ref, b_ref, o_ref):
    # fallback path (only used when the encoder has zero layers)
    o_ref[0] = _layernorm(h_ref[0].astype(jnp.float32),
                          g_ref[...], b_ref[...]).astype(o_ref.dtype)


def _pick_tile(total, target):
    """Largest multiple of 128 that is <= target and divides `total`, else `total`."""
    if total <= target:
        return total
    t = (target // 128) * 128
    while t >= 128:
        if total % t == 0:
            return t
        t -= 128
    return total


def _layer_call(h, lp, num_heads, *, final_ln=None, interm_tile=1024, approx_gelu=False):
    B, S, H = h.shape
    I = lp["w1"].shape[1]
    # generation note: interm_tile ~1024-2048 for v6e (128 MiB VMEM), ~512-1024 for v7x,
    # ~256-512 for v5e; small toy configs just fall back to the full dim.
    tI = _pick_tile(I, interm_tile)
    nI = I // tI
    cdt = lp["w1"].dtype

    def const(shp):
        return pl.BlockSpec(shp, lambda b, i: (0, 0))

    in_specs = [
        pl.BlockSpec((1, S, H), lambda b, i: (b, 0, 0)),   # hidden states
        const((1, H)), const((1, H)),                      # ln1 gamma/beta
        const((H, H)), const((1, H)),                      # Wq, bq
        const((H, H)), const((1, H)),                      # Wk, bk
        const((H, H)), const((1, H)),                      # Wv, bv
        const((H, H)), const((1, H)),                      # Wo, bo
        const((1, H)), const((1, H)),                      # ln2 gamma/beta
        pl.BlockSpec((H, tI), lambda b, i: (0, i)),        # W1 tile
        pl.BlockSpec((1, tI), lambda b, i: (0, i)),        # b1 tile
        pl.BlockSpec((tI, H), lambda b, i: (i, 0)),        # W2 tile
        const((1, H)),                                     # b2
    ]
    args = [h,
            lp["ln1_g"], lp["ln1_b"],
            lp["wq"], lp["bq"], lp["wk"], lp["bk"], lp["wv"], lp["bv"],
            lp["wo"], lp["bo"],
            lp["ln2_g"], lp["ln2_b"],
            lp["w1"], lp["b1"], lp["w2"], lp["b2"]]
    if final_ln is not None:
        in_specs += [const((1, H)), const((1, H))]
        args += [final_ln[0], final_ln[1]]

    kernel = functools.partial(roberta_layer_kernel, num_heads,
                               final_ln is not None, approx_gelu)

    return pl.pallas_call(
        kernel,
        out_shape=jax.ShapeDtypeStruct((B, S, H), h.dtype),
        grid=(B, nI),
        in_specs=in_specs,
        out_specs=pl.BlockSpec((1, S, H), lambda b, i: (b, 0, 0)),
        scratch_shapes=[pltpu.VMEM((S, H), jnp.float32),   # post-attention residual stream
                        pltpu.VMEM((S, H), cdt),           # LN2(x) reused across I tiles
                        pltpu.VMEM((S, H), jnp.float32)],  # FFN accumulator
        input_output_aliases={0: 0},                       # reuse hidden-state buffer in place
        compiler_params=pltpu.CompilerParams(
            dimension_semantics=("parallel", "arbitrary"),
            vmem_limit_bytes=64 * 1024 * 1024),
    )(*args)


def _final_ln_call(h, g, b):
    B, S, H = h.shape
    return pl.pallas_call(
        final_ln_kernel,
        out_shape=jax.ShapeDtypeStruct((B, S, H), h.dtype),
        grid=(B,),
        in_specs=[
            pl.BlockSpec((1, S, H), lambda i: (i, 0, 0)),
            pl.BlockSpec((1, H), lambda i: (0, 0)),
            pl.BlockSpec((1, H), lambda i: (0, 0)),
        ],
        out_specs=pl.BlockSpec((1, S, H), lambda i: (i, 0, 0)),
        compiler_params=pltpu.CompilerParams(dimension_semantics=("parallel",)),
    )(h, g, b)


def roberta_encoder(hidden_states, params, num_heads, *, interm_tile=1024, approx_gelu=False):
    """Forward pass of the provided (pre-LN) RobertaEncoder.

    attention_mask=None, dropout=identity, no aux outputs. The final LayerNorm is fused
    into the last layer's kernel.
    """
    h = hidden_states
    layers = params["layers"]
    n = len(layers)
    if n == 0:
        return _final_ln_call(h, params["final_ln_g"], params["final_ln_b"])
    for li, lp in enumerate(layers):
        fin = (params["final_ln_g"], params["final_ln_b"]) if li == n - 1 else None
        h = _layer_call(h, lp, num_heads, final_ln=fin,
                        interm_tile=interm_tile, approx_gelu=approx_gelu)
    return h


# ------------------------ deterministic parameter init ------------------------

def init_layer_params(key, H, I, dtype=jnp.bfloat16):
    ks = jax.random.split(key, 6)
    std = 0.02

    def lin(k, din, dout):
        # pre-transposed to [in, out]; bf16 storage halves weight DMA / VMEM
        return (jax.random.normal(k, (din, dout), jnp.float32) * std).astype(dtype)

    f32 = jnp.float32
    return dict(
        ln1_g=jnp.ones((1, H), f32), ln1_b=jnp.zeros((1, H), f32),
        wq=lin(ks[0], H, H), bq=jnp.zeros((1, H), f32),
        wk=lin(ks[1], H, H), bk=jnp.zeros((1, H), f32),
        wv=lin(ks[2], H, H), bv=jnp.zeros((1, H), f32),
        wo=lin(ks[3], H, H), bo=jnp.zeros((1, H), f32),
        ln2_g=jnp.ones((1, H), f32), ln2_b=jnp.zeros((1, H), f32),
        w1=lin(ks[4], H, I), b1=jnp.zeros((1, I), f32),
        w2=lin(ks[5], I, H), b2=jnp.zeros((1, H), f32),
    )


def init_encoder_params(key, num_layers, H, I, dtype=jnp.bfloat16):
    keys = jax.random.split(key, max(num_layers, 1))
    return dict(
        layers=[init_layer_params(keys[l], H, I, dtype) for l in range(num_layers)],
        final_ln_g=jnp.ones((1, H), jnp.float32),
        final_ln_b=jnp.zeros((1, H), jnp.float32),
    )


if __name__ == "__main__":
    NUM_LAYERS = 2
    B, S, H, INTER, NUM_HEADS = 2, 8, 32, 64, 4

    root = jax.random.PRNGKey(0)
    k_params, k_x = jax.random.split(root)
    params = init_encoder_params(k_params, NUM_LAYERS, H, INTER, dtype=jnp.bfloat16)
    x = jax.random.normal(k_x, (B, S, H), jnp.float32)

    fwd = jax.jit(functools.partial(roberta_encoder, num_heads=NUM_HEADS))
    out = fwd(x, params)
    jax.block_until_ready(out)

    assert out.shape == (B, S, H)
    assert bool(jnp.all(jnp.isfinite(out)))
    print("KERNEL_OK")
</pallas_src>

<mosaic_0001>
module attributes {stable_mosaic.version = 11 : i64} {
  func.func @roberta_layer_kernel(%arg0: i32, %arg1: i32, %arg2: memref<1x8x32xf32, #tpu.memory_space<vmem>>, %arg3: memref<1x32xf32, #tpu.memory_space<vmem>>, %arg4: memref<1x32xf32, #tpu.memory_space<vmem>>, %arg5: memref<32x32xbf16, #tpu.memory_space<vmem>>, %arg6: memref<1x32xf32, #tpu.memory_space<vmem>>, %arg7: memref<32x32xbf16, #tpu.memory_space<vmem>>, %arg8: memref<1x32xf32, #tpu.memory_space<vmem>>, %arg9: memref<32x32xbf16, #tpu.memory_space<vmem>>, %arg10: memref<1x32xf32, #tpu.memory_space<vmem>>, %arg11: memref<32x32xbf16, #tpu.memory_space<vmem>>, %arg12: memref<1x32xf32, #tpu.memory_space<vmem>>, %arg13: memref<1x32xf32, #tpu.memory_space<vmem>>, %arg14: memref<1x32xf32, #tpu.memory_space<vmem>>, %arg15: memref<32x64xbf16, #tpu.memory_space<vmem>>, %arg16: memref<1x64xf32, #tpu.memory_space<vmem>>, %arg17: memref<64x32xbf16, #tpu.memory_space<vmem>>, %arg18: memref<1x32xf32, #tpu.memory_space<vmem>>, %arg19: memref<1x8x32xf32, #tpu.memory_space<vmem>>, %arg20: memref<8x32xf32, #tpu.memory_space<vmem>>, %arg21: memref<8x32xbf16, #tpu.memory_space<vmem>>, %arg22: memref<8x32xf32, #tpu.memory_space<vmem>>) attributes {dimension_semantics = [#tpu.dimension_semantics<parallel>, #tpu.dimension_semantics<arbitrary>], iteration_bounds = array<i64: 2, 1>, scalar_prefetch = 0 : i64, scratch_operands = 3 : i64, tpu.core_type = #tpu.core_type<tc>, window_params = [{transform_indices = @transform_0, window_bounds = array<i64: 1, 8, 32>}, {pipeline_mode = #tpu.pipeline_mode<synchronous>, transform_indices = @transform_1, window_bounds = array<i64: 1, 32>}, {pipeline_mode = #tpu.pipeline_mode<synchronous>, transform_indices = @transform_2, window_bounds = array<i64: 1, 32>}, {pipeline_mode = #tpu.pipeline_mode<synchronous>, transform_indices = @transform_3, window_bounds = array<i64: 32, 32>}, {pipeline_mode = #tpu.pipeline_mode<synchronous>, transform_indices = @transform_4, window_bounds = array<i64: 1, 32>}, {pipeline_mode = #tpu.pipeline_mode<synchronous>, transform_indices = @transform_5, window_bounds = array<i64: 32, 32>}, {pipeline_mode = #tpu.pipeline_mode<synchronous>, transform_indices = @transform_6, window_bounds = array<i64: 1, 32>}, {pipeline_mode = #tpu.pipeline_mode<synchronous>, transform_indices = @transform_7, window_bounds = array<i64: 32, 32>}, {pipeline_mode = #tpu.pipeline_mode<synchronous>, transform_indices = @transform_8, window_bounds = array<i64: 1, 32>}, {pipeline_mode = #tpu.pipeline_mode<synchronous>, transform_indices = @transform_9, window_bounds = array<i64: 32, 32>}, {pipeline_mode = #tpu.pipeline_mode<synchronous>, transform_indices = @transform_10, window_bounds = array<i64: 1, 32>}, {pipeline_mode = #tpu.pipeline_mode<synchronous>, transform_indices = @transform_11, window_bounds = array<i64: 1, 32>}, {pipeline_mode = #tpu.pipeline_mode<synchronous>, transform_indices = @transform_12, window_bounds = array<i64: 1, 32>}, {transform_indices = @transform_13, window_bounds = array<i64: 32, 64>}, {transform_indices = @transform_14, window_bounds = array<i64: 1, 64>}, {transform_indices = @transform_15, window_bounds = array<i64: 64, 32>}, {pipeline_mode = #tpu.pipeline_mode<synchronous>, transform_indices = @transform_16, window_bounds = array<i64: 1, 32>}, {transform_indices = @transform_17, window_bounds = array<i64: 1, 8, 32>}]} {
    %c0_i32 = arith.constant 0 : i32
    %0 = arith.cmpi eq, %arg1, %c0_i32 : i32
    %1 = arith.extui %0 : i1 to i32
    %c0_i32_0 = arith.constant 0 : i32
    %2 = arith.cmpi ne, %1, %c0_i32_0 : i32
    scf.if %2 {
      %c0_18 = arith.constant 0 : index
      %c0_19 = arith.constant 0 : index
      %c0_20 = arith.constant 0 : index
      %26 = vector.load %arg2[%c0_18, %c0_19, %c0_20] : memref<1x8x32xf32, #tpu.memory_space<vmem>>, vector<1x8x32xf32>
      %27 = vector.shape_cast %26 : vector<1x8x32xf32> to vector<8x32xf32>
      %c0_21 = arith.constant 0 : index
      %c0_22 = arith.constant 0 : index
      %28 = vector.load %arg3[%c0_21, %c0_22] : memref<1x32xf32, #tpu.memory_space<vmem>>, vector<1x32xf32>
      %c0_23 = arith.constant 0 : index
      %c0_24 = arith.constant 0 : index
      %29 = vector.load %arg4[%c0_23, %c0_24] : memref<1x32xf32, #tpu.memory_space<vmem>>, vector<1x32xf32>
      %cst_25 = arith.constant dense<0.000000e+00> : vector<8xf32>
      %30 = vector.multi_reduction <add>, %27, %cst_25 [1] : vector<8x32xf32> to vector<8xf32>
      %31 = vector.shape_cast %30 : vector<8xf32> to vector<8x1xf32>
      %cst_26 = arith.constant 3.200000e+01 : f32
      %32 = vector.broadcast %cst_26 : f32 to vector<8x1xf32>
      %33 = arith.divf %31, %32 : vector<8x1xf32>
      %34 = arith.mulf %27, %27 : vector<8x32xf32>
      %cst_27 = arith.constant dense<0.000000e+00> : vector<8xf32>
      %35 = vector.multi_reduction <add>, %34, %cst_27 [1] : vector<8x32xf32> to vector<8xf32>
      %36 = vector.shape_cast %35 : vector<8xf32> to vector<8x1xf32>
      %cst_28 = arith.constant 3.200000e+01 : f32
      %37 = vector.broadcast %cst_28 : f32 to vector<8x1xf32>
      %38 = arith.divf %36, %37 : vector<8x1xf32>
      %39 = arith.mulf %33, %33 : vector<8x1xf32>
      %40 = arith.subf %38, %39 : vector<8x1xf32>
      %41 = vector.broadcast %33 : vector<8x1xf32> to vector<8x32xf32>
      %42 = arith.subf %27, %41 : vector<8x32xf32>
      %cst_29 = arith.constant 9.99999974E-6 : f32
      %43 = vector.broadcast %cst_29 : f32 to vector<8x1xf32>
      %44 = arith.addf %40, %43 : vector<8x1xf32>
      %45 = math.rsqrt %44 : vector<8x1xf32>
      %46 = vector.broadcast %45 : vector<8x1xf32> to vector<8x32xf32>
      %47 = arith.mulf %42, %46 : vector<8x32xf32>
      %48 = vector.broadcast %28 : vector<1x32xf32> to vector<8x32xf32>
      %49 = arith.mulf %47, %48 : vector<8x32xf32>
      %50 = vector.broadcast %29 : vector<1x32xf32> to vector<8x32xf32>
      %51 = arith.addf %49, %50 : vector<8x32xf32>
      %52 = arith.truncf %51 : vector<8x32xf32> to vector<8x32xbf16>
      %c0_30 = arith.constant 0 : index
      %c0_31 = arith.constant 0 : index
      %53 = vector.load %arg5[%c0_30, %c0_31] : memref<32x32xbf16, #tpu.memory_space<vmem>>, vector<32x32xbf16>
      %cst_32 = arith.constant dense<0.000000e+00> : vector<8x32xf32>
      %54 = tpu.matmul %52, %53, %cst_32 {dimension_numbers = #tpu.dot_dimension_numbers<[1], [0], [0], [1], [0, 0, 1, 1], [], []>} : vector<8x32xbf16>, vector<32x32xbf16>, vector<8x32xf32> -> vector<8x32xf32>
      %c0_33 = arith.constant 0 : index
      %c0_34 = arith.constant 0 : index
      %55 = vector.load %arg6[%c0_33, %c0_34] : memref<1x32xf32, #tpu.memory_space<vmem>>, vector<1x32xf32>
      %56 = vector.broadcast %55 : vector<1x32xf32> to vector<8x32xf32>
      %57 = arith.addf %54, %56 : vector<8x32xf32>
      %c0_35 = arith.constant 0 : index
      %c0_36 = arith.constant 0 : index
      %58 = vector.load %arg7[%c0_35, %c0_36] : memref<32x32xbf16, #tpu.memory_space<vmem>>, vector<32x32xbf16>
      %cst_37 = arith.constant dense<0.000000e+00> : vector<8x32xf32>
      %59 = tpu.matmul %52, %58, %cst_37 {dimension_numbers = #tpu.dot_dimension_numbers<[1], [0], [0], [1], [0, 0, 1, 1], [], []>} : vector<8x32xbf16>, vector<32x32xbf16>, vector<8x32xf32> -> vector<8x32xf32>
      %c0_38 = arith.constant 0 : index
      %c0_39 = arith.constant 0 : index
      %60 = vector.load %arg8[%c0_38, %c0_39] : memref<1x32xf32, #tpu.memory_space<vmem>>, vector<1x32xf32>
      %61 = vector.broadcast %60 : vector<1x32xf32> to vector<8x32xf32>
      %62 = arith.addf %59, %61 : vector<8x32xf32>
      %c0_40 = arith.constant 0 : index
      %c0_41 = arith.constant 0 : index
      %63 = vector.load %arg9[%c0_40, %c0_41] : memref<32x32xbf16, #tpu.memory_space<vmem>>, vector<32x32xbf16>
      %cst_42 = arith.constant dense<0.000000e+00> : vector<8x32xf32>
      %64 = tpu.matmul %52, %63, %cst_42 {dimension_numbers = #tpu.dot_dimension_numbers<[1], [0], [0], [1], [0, 0, 1, 1], [], []>} : vector<8x32xbf16>, vector<32x32xbf16>, vector<8x32xf32> -> vector<8x32xf32>
      %c0_43 = arith.constant 0 : index
      %c0_44 = arith.constant 0 : index
      %65 = vector.load %arg10[%c0_43, %c0_44] : memref<1x32xf32, #tpu.memory_space<vmem>>, vector<1x32xf32>
      %66 = vector.broadcast %65 : vector<1x32xf32> to vector<8x32xf32>
      %67 = arith.addf %64, %66 : vector<8x32xf32>
      %68 = vector.extract_strided_slice %57 {offsets = [0, 0], sizes = [8, 8], strides = [1, 1]} : vector<8x32xf32> to vector<8x8xf32>
      %69 = vector.extract_strided_slice %57 {offsets = [0, 8], sizes = [8, 8], strides = [1, 1]} : vector<8x32xf32> to vector<8x8xf32>
      %70 = vector.extract_strided_slice %57 {offsets = [0, 16], sizes = [8, 8], strides = [1, 1]} : vector<8x32xf32> to vector<8x8xf32>
      %71 = vector.extract_strided_slice %57 {offsets = [0, 24], sizes = [8, 8], strides = [1, 1]} : vector<8x32xf32> to vector<8x8xf32>
      %72 = vector.shape_cast %68 : vector<8x8xf32> to vector<1x8x8xf32>
      %73 = vector.shape_cast %69 : vector<8x8xf32> to vector<1x8x8xf32>
      %74 = vector.shape_cast %70 : vector<8x8xf32> to vector<1x8x8xf32>
      %75 = vector.shape_cast %71 : vector<8x8xf32> to vector<1x8x8xf32>
      %76 = tpu.concatenate %72, %73, %74, %75 in 0 : vector<1x8x8xf32>, vector<1x8x8xf32>, vector<1x8x8xf32>, vector<1x8x8xf32> -> vector<4x8x8xf32>
      %77 = arith.truncf %76 : vector<4x8x8xf32> to vector<4x8x8xbf16>
      %78 = vector.extract_strided_slice %62 {offsets = [0, 0], sizes = [8, 8], strides = [1, 1]} : vector<8x32xf32> to vector<8x8xf32>
      %79 = vector.extract_strided_slice %62 {offsets = [0, 8], sizes = [8, 8], strides = [1, 1]} : vector<8x32xf32> to vector<8x8xf32>
      %80 = vector.extract_strided_slice %62 {offsets = [0, 16], sizes = [8, 8], strides = [1, 1]} : vector<8x32xf32> to vector<8x8xf32>
      %81 = vector.extract_strided_slice %62 {offsets = [0, 24], sizes = [8, 8], strides = [1, 1]} : vector<8x32xf32> to vector<8x8xf32>
      %82 = vector.shape_cast %78 : vector<8x8xf32> to vector<1x8x8xf32>
      %83 = vector.shape_cast %79 : vector<8x8xf32> to vector<1x8x8xf32>
      %84 = vector.shape_cast %80 : vector<8x8xf32> to vector<1x8x8xf32>
      %85 = vector.shape_cast %81 : vector<8x8xf32> to vector<1x8x8xf32>
      %86 = tpu.concatenate %82, %83, %84, %85 in 0 : vector<1x8x8xf32>, vector<1x8x8xf32>, vector<1x8x8xf32>, vector<1x8x8xf32> -> vector<4x8x8xf32>
      %87 = arith.truncf %86 : vector<4x8x8xf32> to vector<4x8x8xbf16>
      %88 = vector.extract_strided_slice %67 {offsets = [0, 0], sizes = [8, 8], strides = [1, 1]} : vector<8x32xf32> to vector<8x8xf32>
      %89 = vector.extract_strided_slice %67 {offsets = [0, 8], sizes = [8, 8], strides = [1, 1]} : vector<8x32xf32> to vector<8x8xf32>
      %90 = vector.extract_strided_slice %67 {offsets = [0, 16], sizes = [8, 8], strides = [1, 1]} : vector<8x32xf32> to vector<8x8xf32>
      %91 = vector.extract_strided_slice %67 {offsets = [0, 24], sizes = [8, 8], strides = [1, 1]} : vector<8x32xf32> to vector<8x8xf32>
      %92 = vector.shape_cast %88 : vector<8x8xf32> to vector<1x8x8xf32>
      %93 = vector.shape_cast %89 : vector<8x8xf32> to vector<1x8x8xf32>
      %94 = vector.shape_cast %90 : vector<8x8xf32> to vector<1x8x8xf32>
      %95 = vector.shape_cast %91 : vector<8x8xf32> to vector<1x8x8xf32>
      %96 = tpu.concatenate %92, %93, %94, %95 in 0 : vector<1x8x8xf32>, vector<1x8x8xf32>, vector<1x8x8xf32>, vector<1x8x8xf32> -> vector<4x8x8xf32>
      %97 = arith.truncf %96 : vector<4x8x8xf32> to vector<4x8x8xbf16>
      "tpu.trace_start"() <{level = 10 : i32, message = "hqd,hkd->hqk"}> : () -> ()
      %cst_45 = arith.constant dense<0.000000e+00> : vector<4x8x8xf32>
      %98 = tpu.matmul %77, %87, %cst_45 {dimension_numbers = #tpu.dot_dimension_numbers<[2], [2], [1], [1], [0, 0, 0, 1, 1, 1], [0], [0]>} : vector<4x8x8xbf16>, vector<4x8x8xbf16>, vector<4x8x8xf32> -> vector<4x8x8xf32>
      "tpu.trace_stop"() : () -> ()
      %cst_46 = arith.constant 0.353553385 : f32
      %99 = vector.broadcast %cst_46 : f32 to vector<4x8x8xf32>
      %100 = arith.mulf %98, %99 : vector<4x8x8xf32>
      %cst_47 = arith.constant dense<0xFF800000> : vector<4x8xf32>
      %101 = vector.multi_reduction <maximumf>, %100, %cst_47 [2] : vector<4x8x8xf32> to vector<4x8xf32>
      %102 = vector.shape_cast %101 : vector<4x8xf32> to vector<4x8x1xf32>
      %103 = vector.broadcast %102 : vector<4x8x1xf32> to vector<4x8x8xf32>
      %104 = arith.subf %100, %103 : vector<4x8x8xf32>
      %105 = math.exp %104 : vector<4x8x8xf32>
      %cst_48 = arith.constant dense<0.000000e+00> : vector<4x8xf32>
      %106 = vector.multi_reduction <add>, %105, %cst_48 [2] : vector<4x8x8xf32> to vector<4x8xf32>
      %107 = vector.shape_cast %106 : vector<4x8xf32> to vector<4x8x1xf32>
      %108 = tpu.reciprocal %107 {approx = true} : vector<4x8x1xf32> -> vector<4x8x1xf32>
      %109 = vector.broadcast %108 : vector<4x8x1xf32> to vector<4x8x8xf32>
      %110 = arith.mulf %105, %109 : vector<4x8x8xf32>
      %111 = arith.truncf %110 : vector<4x8x8xf32> to vector<4x8x8xbf16>
      "tpu.trace_start"() <{level = 10 : i32, message = "hqk,hkd->hqd"}> : () -> ()
      %cst_49 = arith.constant dense<0.000000e+00> : vector<4x8x8xf32>
      %112 = tpu.matmul %111, %97, %cst_49 {dimension_numbers = #tpu.dot_dimension_numbers<[2], [1], [1], [2], [0, 0, 0, 1, 1, 2], [0], [0]>} : vector<4x8x8xbf16>, vector<4x8x8xbf16>, vector<4x8x8xf32> -> vector<4x8x8xf32>
      %cst_50 = arith.constant 0.000000e+00 : f32
      "tpu.trace_stop"() : () -> ()
      %113 = vector.broadcast %cst_50 : f32 to vector<8x32xf32>
      %114 = vector.extract_strided_slice %112 {offsets = [0, 0, 0], sizes = [1, 8, 8], strides = [1, 1, 1]} : vector<4x8x8xf32> to vector<1x8x8xf32>
      %115 = vector.shape_cast %114 : vector<1x8x8xf32> to vector<8x8xf32>
      %116 = arith.truncf %115 : vector<8x8xf32> to vector<8x8xbf16>
      %c0_51 = arith.constant 0 : index
      %c0_52 = arith.constant 0 : index
      %117 = vector.load %arg11[%c0_51, %c0_52] : memref<32x32xbf16, #tpu.memory_space<vmem>>, vector<8x32xbf16>
      %cst_53 = arith.constant dense<0.000000e+00> : vector<8x32xf32>
      %118 = tpu.matmul %116, %117, %cst_53 {dimension_numbers = #tpu.dot_dimension_numbers<[1], [0], [0], [1], [0, 0, 1, 1], [], []>} : vector<8x8xbf16>, vector<8x32xbf16>, vector<8x32xf32> -> vector<8x32xf32>
      %119 = arith.addf %113, %118 : vector<8x32xf32>
      %120 = vector.extract_strided_slice %112 {offsets = [1, 0, 0], sizes = [1, 8, 8], strides = [1, 1, 1]} : vector<4x8x8xf32> to vector<1x8x8xf32>
      %121 = vector.shape_cast %120 : vector<1x8x8xf32> to vector<8x8xf32>
      %122 = arith.truncf %121 : vector<8x8xf32> to vector<8x8xbf16>
      %c8 = arith.constant 8 : index
      %c0_54 = arith.constant 0 : index
      %123 = vector.load %arg11[%c8, %c0_54] : memref<32x32xbf16, #tpu.memory_space<vmem>>, vector<8x32xbf16>
      %cst_55 = arith.constant dense<0.000000e+00> : vector<8x32xf32>
      %124 = tpu.matmul %122, %123, %cst_55 {dimension_numbers = #tpu.dot_dimension_numbers<[1], [0], [0], [1], [0, 0, 1, 1], [], []>} : vector<8x8xbf16>, vector<8x32xbf16>, vector<8x32xf32> -> vector<8x32xf32>
      %125 = arith.addf %119, %124 : vector<8x32xf32>
      %126 = vector.extract_strided_slice %112 {offsets = [2, 0, 0], sizes = [1, 8, 8], strides = [1, 1, 1]} : vector<4x8x8xf32> to vector<1x8x8xf32>
      %127 = vector.shape_cast %126 : vector<1x8x8xf32> to vector<8x8xf32>
      %128 = arith.truncf %127 : vector<8x8xf32> to vector<8x8xbf16>
      %c16 = arith.constant 16 : index
      %c0_56 = arith.constant 0 : index
      %129 = vector.load %arg11[%c16, %c0_56] : memref<32x32xbf16, #tpu.memory_space<vmem>>, vector<8x32xbf16>
      %cst_57 = arith.constant dense<0.000000e+00> : vector<8x32xf32>
      %130 = tpu.matmul %128, %129, %cst_57 {dimension_numbers = #tpu.dot_dimension_numbers<[1], [0], [0], [1], [0, 0, 1, 1], [], []>} : vector<8x8xbf16>, vector<8x32xbf16>, vector<8x32xf32> -> vector<8x32xf32>
      %131 = arith.addf %125, %130 : vector<8x32xf32>
      %132 = vector.extract_strided_slice %112 {offsets = [3, 0, 0], sizes = [1, 8, 8], strides = [1, 1, 1]} : vector<4x8x8xf32> to vector<1x8x8xf32>
      %133 = vector.shape_cast %132 : vector<1x8x8xf32> to vector<8x8xf32>
      %134 = arith.truncf %133 : vector<8x8xf32> to vector<8x8xbf16>
      %c24 = arith.constant 24 : index
      %c0_58 = arith.constant 0 : index
      %135 = vector.load %arg11[%c24, %c0_58] : memref<32x32xbf16, #tpu.memory_space<vmem>>, vector<8x32xbf16>
      %cst_59 = arith.constant dense<0.000000e+00> : vector<8x32xf32>
      %136 = tpu.matmul %134, %135, %cst_59 {dimension_numbers = #tpu.dot_dimension_numbers<[1], [0], [0], [1], [0, 0, 1, 1], [], []>} : vector<8x8xbf16>, vector<8x32xbf16>, vector<8x32xf32> -> vector<8x32xf32>
      %137 = arith.addf %131, %136 : vector<8x32xf32>
      %c0_60 = arith.constant 0 : index
      %c0_61 = arith.constant 0 : index
      %138 = vector.load %arg12[%c0_60, %c0_61] : memref<1x32xf32, #tpu.memory_space<vmem>>, vector<1x32xf32>
      %139 = vector.broadcast %138 : vector<1x32xf32> to vector<8x32xf32>
      %140 = arith.addf %137, %139 : vector<8x32xf32>
      %141 = arith.addf %27, %140 : vector<8x32xf32>
      %c0_62 = arith.constant 0 : index
      %c0_63 = arith.constant 0 : index
      %142 = vector.load %arg20[%c0_62, %c0_63] : memref<8x32xf32, #tpu.memory_space<vmem>>, vector<8x32xf32>
      tpu.vector_store %arg20[%c0_62, %c0_63], %141 {strides = array<i32>} : memref<8x32xf32, #tpu.memory_space<vmem>>, vector<8x32xf32>,
      %c0_64 = arith.constant 0 : index
      %c0_65 = arith.constant 0 : index
      %143 = vector.load %arg13[%c0_64, %c0_65] : memref<1x32xf32, #tpu.memory_space<vmem>>, vector<1x32xf32>
      %c0_66 = arith.constant 0 : index
      %c0_67 = arith.constant 0 : index
      %144 = vector.load %arg14[%c0_66, %c0_67] : memref<1x32xf32, #tpu.memory_space<vmem>>, vector<1x32xf32>
      %cst_68 = arith.constant dense<0.000000e+00> : vector<8xf32>
      %145 = vector.multi_reduction <add>, %141, %cst_68 [1] : vector<8x32xf32> to vector<8xf32>
      %146 = vector.shape_cast %145 : vector<8xf32> to vector<8x1xf32>
      %cst_69 = arith.constant 3.200000e+01 : f32
      %147 = vector.broadcast %cst_69 : f32 to vector<8x1xf32>
      %148 = arith.divf %146, %147 : vector<8x1xf32>
      %149 = arith.mulf %141, %141 : vector<8x32xf32>
      %cst_70 = arith.constant dense<0.000000e+00> : vector<8xf32>
      %150 = vector.multi_reduction <add>, %149, %cst_70 [1] : vector<8x32xf32> to vector<8xf32>
      %151 = vector.shape_cast %150 : vector<8xf32> to vector<8x1xf32>
      %cst_71 = arith.constant 3.200000e+01 : f32
      %152 = vector.broadcast %cst_71 : f32 to vector<8x1xf32>
      %153 = arith.divf %151, %152 : vector<8x1xf32>
      %154 = arith.mulf %148, %148 : vector<8x1xf32>
      %155 = arith.subf %153, %154 : vector<8x1xf32>
      %156 = vector.broadcast %148 : vector<8x1xf32> to vector<8x32xf32>
      %157 = arith.subf %141, %156 : vector<8x32xf32>
      %cst_72 = arith.constant 9.99999974E-6 : f32
      %158 = vector.broadcast %cst_72 : f32 to vector<8x1xf32>
      %159 = arith.addf %155, %158 : vector<8x1xf32>
      %160 = math.rsqrt %159 : vector<8x1xf32>
      %161 = vector.broadcast %160 : vector<8x1xf32> to vector<8x32xf32>
      %162 = arith.mulf %157, %161 : vector<8x32xf32>
      %163 = vector.broadcast %143 : vector<1x32xf32> to vector<8x32xf32>
      %164 = arith.mulf %162, %163 : vector<8x32xf32>
      %165 = vector.broadcast %144 : vector<1x32xf32> to vector<8x32xf32>
      %166 = arith.addf %164, %165 : vector<8x32xf32>
      %167 = arith.truncf %166 : vector<8x32xf32> to vector<8x32xbf16>
      %c0_73 = arith.constant 0 : index
      %c0_74 = arith.constant 0 : index
      %168 = vector.load %arg21[%c0_73, %c0_74] : memref<8x32xbf16, #tpu.memory_space<vmem>>, vector<8x32xbf16>
      tpu.vector_store %arg21[%c0_73, %c0_74], %167 {strides = array<i32>} : memref<8x32xbf16, #tpu.memory_space<vmem>>, vector<8x32xbf16>,
      %cst_75 = arith.constant 0.000000e+00 : f32
      %169 = vector.broadcast %cst_75 : f32 to vector<8x32xf32>
      %c0_76 = arith.constant 0 : index
      %c0_77 = arith.constant 0 : index
      %170 = vector.load %arg22[%c0_76, %c0_77] : memref<8x32xf32, #tpu.memory_space<vmem>>, vector<8x32xf32>
      tpu.vector_store %arg22[%c0_76, %c0_77], %169 {strides = array<i32>} : memref<8x32xf32, #tpu.memory_space<vmem>>, vector<8x32xf32>,
    } else {
    }
    %c0 = arith.constant 0 : index
    %c0_1 = arith.constant 0 : index
    %3 = vector.load %arg21[%c0, %c0_1] : memref<8x32xbf16, #tpu.memory_space<vmem>>, vector<8x32xbf16>
    %c0_2 = arith.constant 0 : index
    %c0_3 = arith.constant 0 : index
    %4 = vector.load %arg15[%c0_2, %c0_3] : memref<32x64xbf16, #tpu.memory_space<vmem>>, vector<32x64xbf16>
    %cst = arith.constant dense<0.000000e+00> : vector<8x64xf32>
    %5 = tpu.matmul %3, %4, %cst {dimension_numbers = #tpu.dot_dimension_numbers<[1], [0], [0], [1], [0, 0, 1, 1], [], []>} : vector<8x32xbf16>, vector<32x64xbf16>, vector<8x64xf32> -> vector<8x64xf32>
    %c0_4 = arith.constant 0 : index
    %c0_5 = arith.constant 0 : index
    %6 = vector.load %arg16[%c0_4, %c0_5] : memref<1x64xf32, #tpu.memory_space<vmem>>, vector<1x64xf32>
    %7 = vector.broadcast %6 : vector<1x64xf32> to vector<8x64xf32>
    %8 = arith.addf %5, %7 : vector<8x64xf32>
    %cst_6 = arith.constant 5.000000e-01 : f32
    %9 = vector.broadcast %cst_6 : f32 to vector<8x64xf32>
    %10 = arith.mulf %9, %8 : vector<8x64xf32>
    %cst_7 = arith.constant 0.707106769 : f32
    %11 = vector.broadcast %cst_7 : f32 to vector<8x64xf32>
    %12 = arith.mulf %8, %11 : vector<8x64xf32>
    %13 = math.erf %12 : vector<8x64xf32>
    %cst_8 = arith.constant 1.000000e+00 : f32
    %14 = vector.broadcast %cst_8 : f32 to vector<8x64xf32>
    %15 = arith.addf %14, %13 : vector<8x64xf32>
    %16 = arith.mulf %10, %15 : vector<8x64xf32>
    %c0_9 = arith.constant 0 : index
    %c0_10 = arith.constant 0 : index
    %17 = vector.load %arg22[%c0_9, %c0_10] : memref<8x32xf32, #tpu.memory_space<vmem>>, vector<8x32xf32>
    %18 = arith.truncf %16 : vector<8x64xf32> to vector<8x64xbf16>
    %c0_11 = arith.constant 0 : index
    %c0_12 = arith.constant 0 : index
    %19 = vector.load %arg17[%c0_11, %c0_12] : memref<64x32xbf16, #tpu.memory_space<vmem>>, vector<64x32xbf16>
    %cst_13 = arith.constant dense<0.000000e+00> : vector<8x32xf32>
    %20 = tpu.matmul %18, %19, %cst_13 {dimension_numbers = #tpu.dot_dimension_numbers<[1], [0], [0], [1], [0, 0, 1, 1], [], []>} : vector<8x64xbf16>, vector<64x32xbf16>, vector<8x32xf32> -> vector<8x32xf32>
    %21 = arith.addf %17, %20 : vector<8x32xf32>
    %c0_14 = arith.constant 0 : index
    %c0_15 = arith.constant 0 : index
    %22 = vector.load %arg22[%c0_14, %c0_15] : memref<8x32xf32, #tpu.memory_space<vmem>>, vector<8x32xf32>
    tpu.vector_store %arg22[%c0_14, %c0_15], %21 {strides = array<i32>} : memref<8x32xf32, #tpu.memory_space<vmem>>, vector<8x32xf32>,
    %c0_i32_16 = arith.constant 0 : i32
    %23 = arith.cmpi eq, %arg1, %c0_i32_16 : i32
    %24 = arith.extui %23 : i1 to i32
    %c0_i32_17 = arith.constant 0 : i32
    %25 = arith.cmpi ne, %24, %c0_i32_17 : i32
    scf.if %25 {
      %c0_18 = arith.constant 0 : index
      %c0_19 = arith.constant 0 : index
      %26 = vector.load %arg20[%c0_18, %c0_19] : memref<8x32xf32, #tpu.memory_space<vmem>>, vector<8x32xf32>
      %c0_20 = arith.constant 0 : index
      %c0_21 = arith.constant 0 : index
      %27 = vector.load %arg22[%c0_20, %c0_21] : memref<8x32xf32, #tpu.memory_space<vmem>>, vector<8x32xf32>
      %28 = arith.addf %26, %27 : vector<8x32xf32>
      %c0_22 = arith.constant 0 : index
      %c0_23 = arith.constant 0 : index
      %29 = vector.load %arg18[%c0_22, %c0_23] : memref<1x32xf32, #tpu.memory_space<vmem>>, vector<1x32xf32>
      %30 = vector.broadcast %29 : vector<1x32xf32> to vector<8x32xf32>
      %31 = arith.addf %28, %30 : vector<8x32xf32>
      %c0_24 = arith.constant 0 : index
      %c0_25 = arith.constant 0 : index
      %c0_26 = arith.constant 0 : index
      %32 = vector.load %arg19[%c0_24, %c0_25, %c0_26] : memref<1x8x32xf32, #tpu.memory_space<vmem>>, vector<1x8x32xf32>
      %33 = vector.shape_cast %32 : vector<1x8x32xf32> to vector<8x32xf32>
      %34 = vector.shape_cast %31 : vector<8x32xf32> to vector<1x8x32xf32>
      tpu.vector_store %arg19[%c0_24, %c0_25, %c0_26], %34 {strides = array<i32>} : memref<1x8x32xf32, #tpu.memory_space<vmem>>, vector<1x8x32xf32>,
    } else {
    }
    return
  }
  func.func @transform_0(%arg0: i32, %arg1: i32) -> (i32, i32, i32) {
    %c0_i32 = arith.constant 0 : i32
    %c0_i32_0 = arith.constant 0 : i32
    %c0_i32_1 = arith.constant 0 : i32
    return %arg0, %c0_i32, %c0_i32_0 : i32, i32, i32
  }
  func.func @transform_1(%arg0: i32, %arg1: i32) -> (i32, i32) {
    %c0_i32 = arith.constant 0 : i32
    %c0_i32_0 = arith.constant 0 : i32
    %c0_i32_1 = arith.constant 0 : i32
    return %c0_i32, %c0_i32_0 : i32, i32
  }
  func.func @transform_2(%arg0: i32, %arg1: i32) -> (i32, i32) {
    %c0_i32 = arith.constant 0 : i32
    %c0_i32_0 = arith.constant 0 : i32
    %c0_i32_1 = arith.constant 0 : i32
    return %c0_i32, %c0_i32_0 : i32, i32
  }
  func.func @transform_3(%arg0: i32, %arg1: i32) -> (i32, i32) {
    %c0_i32 = arith.constant 0 : i32
    %c0_i32_0 = arith.constant 0 : i32
    %c0_i32_1 = arith.constant 0 : i32
    return %c0_i32, %c0_i32_0 : i32, i32
  }
  func.func @transform_4(%arg0: i32, %arg1: i32) -> (i32, i32) {
    %c0_i32 = arith.constant 0 : i32
    %c0_i32_0 = arith.constant 0 : i32
    %c0_i32_1 = arith.constant 0 : i32
    return %c0_i32, %c0_i32_0 : i32, i32
  }
  func.func @transform_5(%arg0: i32, %arg1: i32) -> (i32, i32) {
    %c0_i32 = arith.constant 0 : i32
    %c0_i32_0 = arith.constant 0 : i32
    %c0_i32_1 = arith.constant 0 : i32
    return %c0_i32, %c0_i32_0 : i32, i32
  }
  func.func @transform_6(%arg0: i32, %arg1: i32) -> (i32, i32) {
    %c0_i32 = arith.constant 0 : i32
    %c0_i32_0 = arith.constant 0 : i32
    %c0_i32_1 = arith.constant 0 : i32
    return %c0_i32, %c0_i32_0 : i32, i32
  }
  func.func @transform_7(%arg0: i32, %arg1: i32) -> (i32, i32) {
    %c0_i32 = arith.constant 0 : i32
    %c0_i32_0 = arith.constant 0 : i32
    %c0_i32_1 = arith.constant 0 : i32
    return %c0_i32, %c0_i32_0 : i32, i32
  }
  func.func @transform_8(%arg0: i32, %arg1: i32) -> (i32, i32) {
    %c0_i32 = arith.constant 0 : i32
    %c0_i32_0 = arith.constant 0 : i32
    %c0_i32_1 = arith.constant 0 : i32
    return %c0_i32, %c0_i32_0 : i32, i32
  }
  func.func @transform_9(%arg0: i32, %arg1: i32) -> (i32, i32) {
    %c0_i32 = arith.constant 0 : i32
    %c0_i32_0 = arith.constant 0 : i32
    %c0_i32_1 = arith.constant 0 : i32
    return %c0_i32, %c0_i32_0 : i32, i32
  }
  func.func @transform_10(%arg0: i32, %arg1: i32) -> (i32, i32) {
    %c0_i32 = arith.constant 0 : i32
    %c0_i32_0 = arith.constant 0 : i32
    %c0_i32_1 = arith.constant 0 : i32
    return %c0_i32, %c0_i32_0 : i32, i32
  }
  func.func @transform_11(%arg0: i32, %arg1: i32) -> (i32, i32) {
    %c0_i32 = arith.constant 0 : i32
    %c0_i32_0 = arith.constant 0 : i32
    %c0_i32_1 = arith.constant 0 : i32
    return %c0_i32, %c0_i32_0 : i32, i32
  }
  func.func @transform_12(%arg0: i32, %arg1: i32) -> (i32, i32) {
    %c0_i32 = arith.constant 0 : i32
    %c0_i32_0 = arith.constant 0 : i32
    %c0_i32_1 = arith.constant 0 : i32
    return %c0_i32, %c0_i32_0 : i32, i32
  }
  func.func @transform_13(%arg0: i32, %arg1: i32) -> (i32, i32) {
    %c0_i32 = arith.constant 0 : i32
    %c0_i32_0 = arith.constant 0 : i32
    return %c0_i32, %arg1 : i32, i32
  }
  func.func @transform_14(%arg0: i32, %arg1: i32) -> (i32, i32) {
    %c0_i32 = arith.constant 0 : i32
    %c0_i32_0 = arith.constant 0 : i32
    return %c0_i32, %arg1 : i32, i32
  }
  func.func @transform_15(%arg0: i32, %arg1: i32) -> (i32, i32) {
    %c0_i32 = arith.constant 0 : i32
    %c0_i32_0 = arith.constant 0 : i32
    return %arg1, %c0_i32 : i32, i32
  }
  func.func @transform_16(%arg0: i32, %arg1: i32) -> (i32, i32) {
    %c0_i32 = arith.constant 0 : i32
    %c0_i32_0 = arith.constant 0 : i32
    %c0_i32_1 = arith.constant 0 : i32
    return %c0_i32, %c0_i32_0 : i32, i32
  }
  func.func @transform_17(%arg0: i32, %arg1: i32) -> (i32, i32, i32) {
    %c0_i32 = arith.constant 0 : i32
    %c0_i32_0 = arith.constant 0 : i32
    %c0_i32_1 = arith.constant 0 : i32
    return %arg0, %c0_i32, %c0_i32_0 : i32, i32, i32
  }
}

module attributes {stable_mosaic.version = 11 : i64} {
  func.func @roberta_layer_kernel(%arg0: i32, %arg1: i32, %arg2: memref<1x8x32xf32, #tpu.memory_space<vmem>>, %arg3: memref<1x32xf32, #tpu.memory_space<vmem>>, %arg4: memref<1x32xf32, #tpu.memory_space<vmem>>, %arg5: memref<32x32xbf16, #tpu.memory_space<vmem>>, %arg6: memref<1x32xf32, #tpu.memory_space<vmem>>, %arg7: memref<32x32xbf16, #tpu.memory_space<vmem>>, %arg8: memref<1x32xf32, #tpu.memory_space<vmem>>, %arg9: memref<32x32xbf16, #tpu.memory_space<vmem>>, %arg10: memref<1x32xf32, #tpu.memory_space<vmem>>, %arg11: memref<32x32xbf16, #tpu.memory_space<vmem>>, %arg12: memref<1x32xf32, #tpu.memory_space<vmem>>, %arg13: memref<1x32xf32, #tpu.memory_space<vmem>>, %arg14: memref<1x32xf32, #tpu.memory_space<vmem>>, %arg15: memref<32x64xbf16, #tpu.memory_space<vmem>>, %arg16: memref<1x64xf32, #tpu.memory_space<vmem>>, %arg17: memref<64x32xbf16, #tpu.memory_space<vmem>>, %arg18: memref<1x32xf32, #tpu.memory_space<vmem>>, %arg19: memref<1x32xf32, #tpu.memory_space<vmem>>, %arg20: memref<1x32xf32, #tpu.memory_space<vmem>>, %arg21: memref<1x8x32xf32, #tpu.memory_space<vmem>>, %arg22: memref<8x32xf32, #tpu.memory_space<vmem>>, %arg23: memref<8x32xbf16, #tpu.memory_space<vmem>>, %arg24: memref<8x32xf32, #tpu.memory_space<vmem>>) attributes {dimension_semantics = [#tpu.dimension_semantics<parallel>, #tpu.dimension_semantics<arbitrary>], iteration_bounds = array<i64: 2, 1>, scalar_prefetch = 0 : i64, scratch_operands = 3 : i64, tpu.core_type = #tpu.core_type<tc>, window_params = [{transform_indices = @transform_0, window_bounds = array<i64: 1, 8, 32>}, {pipeline_mode = #tpu.pipeline_mode<synchronous>, transform_indices = @transform_1, window_bounds = array<i64: 1, 32>}, {pipeline_mode = #tpu.pipeline_mode<synchronous>, transform_indices = @transform_2, window_bounds = array<i64: 1, 32>}, {pipeline_mode = #tpu.pipeline_mode<synchronous>, transform_indices = @transform_3, window_bounds = array<i64: 32, 32>}, {pipeline_mode = #tpu.pipeline_mode<synchronous>, transform_indices = @transform_4, window_bounds = array<i64: 1, 32>}, {pipeline_mode = #tpu.pipeline_mode<synchronous>, transform_indices = @transform_5, window_bounds = array<i64: 32, 32>}, {pipeline_mode = #tpu.pipeline_mode<synchronous>, transform_indices = @transform_6, window_bounds = array<i64: 1, 32>}, {pipeline_mode = #tpu.pipeline_mode<synchronous>, transform_indices = @transform_7, window_bounds = array<i64: 32, 32>}, {pipeline_mode = #tpu.pipeline_mode<synchronous>, transform_indices = @transform_8, window_bounds = array<i64: 1, 32>}, {pipeline_mode = #tpu.pipeline_mode<synchronous>, transform_indices = @transform_9, window_bounds = array<i64: 32, 32>}, {pipeline_mode = #tpu.pipeline_mode<synchronous>, transform_indices = @transform_10, window_bounds = array<i64: 1, 32>}, {pipeline_mode = #tpu.pipeline_mode<synchronous>, transform_indices = @transform_11, window_bounds = array<i64: 1, 32>}, {pipeline_mode = #tpu.pipeline_mode<synchronous>, transform_indices = @transform_12, window_bounds = array<i64: 1, 32>}, {transform_indices = @transform_13, window_bounds = array<i64: 32, 64>}, {transform_indices = @transform_14, window_bounds = array<i64: 1, 64>}, {transform_indices = @transform_15, window_bounds = array<i64: 64, 32>}, {pipeline_mode = #tpu.pipeline_mode<synchronous>, transform_indices = @transform_16, window_bounds = array<i64: 1, 32>}, {pipeline_mode = #tpu.pipeline_mode<synchronous>, transform_indices = @transform_17, window_bounds = array<i64: 1, 32>}, {pipeline_mode = #tpu.pipeline_mode<synchronous>, transform_indices = @transform_18, window_bounds = array<i64: 1, 32>}, {transform_indices = @transform_19, window_bounds = array<i64: 1, 8, 32>}]} {
    %c0_i32 = arith.constant 0 : i32
    %0 = arith.cmpi eq, %arg1, %c0_i32 : i32
    %1 = arith.extui %0 : i1 to i32
    %c0_i32_0 = arith.constant 0 : i32
    %2 = arith.cmpi ne, %1, %c0_i32_0 : i32
    scf.if %2 {
      %c0_18 = arith.constant 0 : index
      %c0_19 = arith.constant 0 : index
      %c0_20 = arith.constant 0 : index
      %26 = vector.load %arg2[%c0_18, %c0_19, %c0_20] : memref<1x8x32xf32, #tpu.memory_space<vmem>>, vector<1x8x32xf32>
      %27 = vector.shape_cast %26 : vector<1x8x32xf32> to vector<8x32xf32>
      %c0_21 = arith.constant 0 : index
      %c0_22 = arith.constant 0 : index
      %28 = vector.load %arg3[%c0_21, %c0_22] : memref<1x32xf32, #tpu.memory_space<vmem>>, vector<1x32xf32>
      %c0_23 = arith.constant 0 : index
      %c0_24 = arith.constant 0 : index
      %29 = vector.load %arg4[%c0_23, %c0_24] : memref<1x32xf32, #tpu.memory_space<vmem>>, vector<1x32xf32>
      %cst_25 = arith.constant dense<0.000000e+00> : vector<8xf32>
      %30 = vector.multi_reduction <add>, %27, %cst_25 [1] : vector<8x32xf32> to vector<8xf32>
      %31 = vector.shape_cast %30 : vector<8xf32> to vector<8x1xf32>
      %cst_26 = arith.constant 3.200000e+01 : f32
      %32 = vector.broadcast %cst_26 : f32 to vector<8x1xf32>
      %33 = arith.divf %31, %32 : vector<8x1xf32>
      %34 = arith.mulf %27, %27 : vector<8x32xf32>
      %cst_27 = arith.constant dense<0.000000e+00> : vector<8xf32>
      %35 = vector.multi_reduction <add>, %34, %cst_27 [1] : vector<8x32xf32> to vector<8xf32>
      %36 = vector.shape_cast %35 : vector<8xf32> to vector<8x1xf32>
      %cst_28 = arith.constant 3.200000e+01 : f32
      %37 = vector.broadcast %cst_28 : f32 to vector<8x1xf32>
      %38 = arith.divf %36, %37 : vector<8x1xf32>
      %39 = arith.mulf %33, %33 : vector<8x1xf32>
      %40 = arith.subf %38, %39 : vector<8x1xf32>
      %41 = vector.broadcast %33 : vector<8x1xf32> to vector<8x32xf32>
      %42 = arith.subf %27, %41 : vector<8x32xf32>
      %cst_29 = arith.constant 9.99999974E-6 : f32
      %43 = vector.broadcast %cst_29 : f32 to vector<8x1xf32>
      %44 = arith.addf %40, %43 : vector<8x1xf32>
      %45 = math.rsqrt %44 : vector<8x1xf32>
      %46 = vector.broadcast %45 : vector<8x1xf32> to vector<8x32xf32>
      %47 = arith.mulf %42, %46 : vector<8x32xf32>
      %48 = vector.broadcast %28 : vector<1x32xf32> to vector<8x32xf32>
      %49 = arith.mulf %47, %48 : vector<8x32xf32>
      %50 = vector.broadcast %29 : vector<1x32xf32> to vector<8x32xf32>
      %51 = arith.addf %49, %50 : vector<8x32xf32>
      %52 = arith.truncf %51 : vector<8x32xf32> to vector<8x32xbf16>
      %c0_30 = arith.constant 0 : index
      %c0_31 = arith.constant 0 : index
      %53 = vector.load %arg5[%c0_30, %c0_31] : memref<32x32xbf16, #tpu.memory_space<vmem>>, vector<32x32xbf16>
      %cst_32 = arith.constant dense<0.000000e+00> : vector<8x32xf32>
      %54 = tpu.matmul %52, %53, %cst_32 {dimension_numbers = #tpu.dot_dimension_numbers<[1], [0], [0], [1], [0, 0, 1, 1], [], []>} : vector<8x32xbf16>, vector<32x32xbf16>, vector<8x32xf32> -> vector<8x32xf32>
      %c0_33 = arith.constant 0 : index
      %c0_34 = arith.constant 0 : index
      %55 = vector.load %arg6[%c0_33, %c0_34] : memref<1x32xf32, #tpu.memory_space<vmem>>, vector<1x32xf32>
      %56 = vector.broadcast %55 : vector<1x32xf32> to vector<8x32xf32>
      %57 = arith.addf %54, %56 : vector<8x32xf32>
      %c0_35 = arith.constant 0 : index
      %c0_36 = arith.constant 0 : index
      %58 = vector.load %arg7[%c0_35, %c0_36] : memref<32x32xbf16, #tpu.memory_space<vmem>>, vector<32x32xbf16>
      %cst_37 = arith.constant dense<0.000000e+00> : vector<8x32xf32>
      %59 = tpu.matmul %52, %58, %cst_37 {dimension_numbers = #tpu.dot_dimension_numbers<[1], [0], [0], [1], [0, 0, 1, 1], [], []>} : vector<8x32xbf16>, vector<32x32xbf16>, vector<8x32xf32> -> vector<8x32xf32>
      %c0_38 = arith.constant 0 : index
      %c0_39 = arith.constant 0 : index
      %60 = vector.load %arg8[%c0_38, %c0_39] : memref<1x32xf32, #tpu.memory_space<vmem>>, vector<1x32xf32>
      %61 = vector.broadcast %60 : vector<1x32xf32> to vector<8x32xf32>
      %62 = arith.addf %59, %61 : vector<8x32xf32>
      %c0_40 = arith.constant 0 : index
      %c0_41 = arith.constant 0 : index
      %63 = vector.load %arg9[%c0_40, %c0_41] : memref<32x32xbf16, #tpu.memory_space<vmem>>, vector<32x32xbf16>
      %cst_42 = arith.constant dense<0.000000e+00> : vector<8x32xf32>
      %64 = tpu.matmul %52, %63, %cst_42 {dimension_numbers = #tpu.dot_dimension_numbers<[1], [0], [0], [1], [0, 0, 1, 1], [], []>} : vector<8x32xbf16>, vector<32x32xbf16>, vector<8x32xf32> -> vector<8x32xf32>
      %c0_43 = arith.constant 0 : index
      %c0_44 = arith.constant 0 : index
      %65 = vector.load %arg10[%c0_43, %c0_44] : memref<1x32xf32, #tpu.memory_space<vmem>>, vector<1x32xf32>
      %66 = vector.broadcast %65 : vector<1x32xf32> to vector<8x32xf32>
      %67 = arith.addf %64, %66 : vector<8x32xf32>
      %68 = vector.extract_strided_slice %57 {offsets = [0, 0], sizes = [8, 8], strides = [1, 1]} : vector<8x32xf32> to vector<8x8xf32>
      %69 = vector.extract_strided_slice %57 {offsets = [0, 8], sizes = [8, 8], strides = [1, 1]} : vector<8x32xf32> to vector<8x8xf32>
      %70 = vector.extract_strided_slice %57 {offsets = [0, 16], sizes = [8, 8], strides = [1, 1]} : vector<8x32xf32> to vector<8x8xf32>
      %71 = vector.extract_strided_slice %57 {offsets = [0, 24], sizes = [8, 8], strides = [1, 1]} : vector<8x32xf32> to vector<8x8xf32>
      %72 = vector.shape_cast %68 : vector<8x8xf32> to vector<1x8x8xf32>
      %73 = vector.shape_cast %69 : vector<8x8xf32> to vector<1x8x8xf32>
      %74 = vector.shape_cast %70 : vector<8x8xf32> to vector<1x8x8xf32>
      %75 = vector.shape_cast %71 : vector<8x8xf32> to vector<1x8x8xf32>
      %76 = tpu.concatenate %72, %73, %74, %75 in 0 : vector<1x8x8xf32>, vector<1x8x8xf32>, vector<1x8x8xf32>, vector<1x8x8xf32> -> vector<4x8x8xf32>
      %77 = arith.truncf %76 : vector<4x8x8xf32> to vector<4x8x8xbf16>
      %78 = vector.extract_strided_slice %62 {offsets = [0, 0], sizes = [8, 8], strides = [1, 1]} : vector<8x32xf32> to vector<8x8xf32>
      %79 = vector.extract_strided_slice %62 {offsets = [0, 8], sizes = [8, 8], strides = [1, 1]} : vector<8x32xf32> to vector<8x8xf32>
      %80 = vector.extract_strided_slice %62 {offsets = [0, 16], sizes = [8, 8], strides = [1, 1]} : vector<8x32xf32> to vector<8x8xf32>
      %81 = vector.extract_strided_slice %62 {offsets = [0, 24], sizes = [8, 8], strides = [1, 1]} : vector<8x32xf32> to vector<8x8xf32>
      %82 = vector.shape_cast %78 : vector<8x8xf32> to vector<1x8x8xf32>
      %83 = vector.shape_cast %79 : vector<8x8xf32> to vector<1x8x8xf32>
      %84 = vector.shape_cast %80 : vector<8x8xf32> to vector<1x8x8xf32>
      %85 = vector.shape_cast %81 : vector<8x8xf32> to vector<1x8x8xf32>
      %86 = tpu.concatenate %82, %83, %84, %85 in 0 : vector<1x8x8xf32>, vector<1x8x8xf32>, vector<1x8x8xf32>, vector<1x8x8xf32> -> vector<4x8x8xf32>
      %87 = arith.truncf %86 : vector<4x8x8xf32> to vector<4x8x8xbf16>
      %88 = vector.extract_strided_slice %67 {offsets = [0, 0], sizes = [8, 8], strides = [1, 1]} : vector<8x32xf32> to vector<8x8xf32>
      %89 = vector.extract_strided_slice %67 {offsets = [0, 8], sizes = [8, 8], strides = [1, 1]} : vector<8x32xf32> to vector<8x8xf32>
      %90 = vector.extract_strided_slice %67 {offsets = [0, 16], sizes = [8, 8], strides = [1, 1]} : vector<8x32xf32> to vector<8x8xf32>
      %91 = vector.extract_strided_slice %67 {offsets = [0, 24], sizes = [8, 8], strides = [1, 1]} : vector<8x32xf32> to vector<8x8xf32>
      %92 = vector.shape_cast %88 : vector<8x8xf32> to vector<1x8x8xf32>
      %93 = vector.shape_cast %89 : vector<8x8xf32> to vector<1x8x8xf32>
      %94 = vector.shape_cast %90 : vector<8x8xf32> to vector<1x8x8xf32>
      %95 = vector.shape_cast %91 : vector<8x8xf32> to vector<1x8x8xf32>
      %96 = tpu.concatenate %92, %93, %94, %95 in 0 : vector<1x8x8xf32>, vector<1x8x8xf32>, vector<1x8x8xf32>, vector<1x8x8xf32> -> vector<4x8x8xf32>
      %97 = arith.truncf %96 : vector<4x8x8xf32> to vector<4x8x8xbf16>
      "tpu.trace_start"() <{level = 10 : i32, message = "hqd,hkd->hqk"}> : () -> ()
      %cst_45 = arith.constant dense<0.000000e+00> : vector<4x8x8xf32>
      %98 = tpu.matmul %77, %87, %cst_45 {dimension_numbers = #tpu.dot_dimension_numbers<[2], [2], [1], [1], [0, 0, 0, 1, 1, 1], [0], [0]>} : vector<4x8x8xbf16>, vector<4x8x8xbf16>, vector<4x8x8xf32> -> vector<4x8x8xf32>
      "tpu.trace_stop"() : () -> ()
      %cst_46 = arith.constant 0.353553385 : f32
      %99 = vector.broadcast %cst_46 : f32 to vector<4x8x8xf32>
      %100 = arith.mulf %98, %99 : vector<4x8x8xf32>
      %cst_47 = arith.constant dense<0xFF800000> : vector<4x8xf32>
      %101 = vector.multi_reduction <maximumf>, %100, %cst_47 [2] : vector<4x8x8xf32> to vector<4x8xf32>
      %102 = vector.shape_cast %101 : vector<4x8xf32> to vector<4x8x1xf32>
      %103 = vector.broadcast %102 : vector<4x8x1xf32> to vector<4x8x8xf32>
      %104 = arith.subf %100, %103 : vector<4x8x8xf32>
      %105 = math.exp %104 : vector<4x8x8xf32>
      %cst_48 = arith.constant dense<0.000000e+00> : vector<4x8xf32>
      %106 = vector.multi_reduction <add>, %105, %cst_48 [2] : vector<4x8x8xf32> to vector<4x8xf32>
      %107 = vector.shape_cast %106 : vector<4x8xf32> to vector<4x8x1xf32>
      %108 = tpu.reciprocal %107 {approx = true} : vector<4x8x1xf32> -> vector<4x8x1xf32>
      %109 = vector.broadcast %108 : vector<4x8x1xf32> to vector<4x8x8xf32>
      %110 = arith.mulf %105, %109 : vector<4x8x8xf32>
      %111 = arith.truncf %110 : vector<4x8x8xf32> to vector<4x8x8xbf16>
      "tpu.trace_start"() <{level = 10 : i32, message = "hqk,hkd->hqd"}> : () -> ()
      %cst_49 = arith.constant dense<0.000000e+00> : vector<4x8x8xf32>
      %112 = tpu.matmul %111, %97, %cst_49 {dimension_numbers = #tpu.dot_dimension_numbers<[2], [1], [1], [2], [0, 0, 0, 1, 1, 2], [0], [0]>} : vector<4x8x8xbf16>, vector<4x8x8xbf16>, vector<4x8x8xf32> -> vector<4x8x8xf32>
      %cst_50 = arith.constant 0.000000e+00 : f32
      "tpu.trace_stop"() : () -> ()
      %113 = vector.broadcast %cst_50 : f32 to vector<8x32xf32>
      %114 = vector.extract_strided_slice %112 {offsets = [0, 0, 0], sizes = [1, 8, 8], strides = [1, 1, 1]} : vector<4x8x8xf32> to vector<1x8x8xf32>
      %115 = vector.shape_cast %114 : vector<1x8x8xf32> to vector<8x8xf32>
      %116 = arith.truncf %115 : vector<8x8xf32> to vector<8x8xbf16>
      %c0_51 = arith.constant 0 : index
      %c0_52 = arith.constant 0 : index
      %117 = vector.load %arg11[%c0_51, %c0_52] : memref<32x32xbf16, #tpu.memory_space<vmem>>, vector<8x32xbf16>
      %cst_53 = arith.constant dense<0.000000e+00> : vector<8x32xf32>
      %118 = tpu.matmul %116, %117, %cst_53 {dimension_numbers = #tpu.dot_dimension_numbers<[1], [0], [0], [1], [0, 0, 1, 1], [], []>} : vector<8x8xbf16>, vector<8x32xbf16>, vector<8x32xf32> -> vector<8x32xf32>
      %119 = arith.addf %113, %118 : vector<8x32xf32>
      %120 = vector.extract_strided_slice %112 {offsets = [1, 0, 0], sizes = [1, 8, 8], strides = [1, 1, 1]} : vector<4x8x8xf32> to vector<1x8x8xf32>
      %121 = vector.shape_cast %120 : vector<1x8x8xf32> to vector<8x8xf32>
      %122 = arith.truncf %121 : vector<8x8xf32> to vector<8x8xbf16>
      %c8 = arith.constant 8 : index
      %c0_54 = arith.constant 0 : index
      %123 = vector.load %arg11[%c8, %c0_54] : memref<32x32xbf16, #tpu.memory_space<vmem>>, vector<8x32xbf16>
      %cst_55 = arith.constant dense<0.000000e+00> : vector<8x32xf32>
      %124 = tpu.matmul %122, %123, %cst_55 {dimension_numbers = #tpu.dot_dimension_numbers<[1], [0], [0], [1], [0, 0, 1, 1], [], []>} : vector<8x8xbf16>, vector<8x32xbf16>, vector<8x32xf32> -> vector<8x32xf32>
      %125 = arith.addf %119, %124 : vector<8x32xf32>
      %126 = vector.extract_strided_slice %112 {offsets = [2, 0, 0], sizes = [1, 8, 8], strides = [1, 1, 1]} : vector<4x8x8xf32> to vector<1x8x8xf32>
      %127 = vector.shape_cast %126 : vector<1x8x8xf32> to vector<8x8xf32>
      %128 = arith.truncf %127 : vector<8x8xf32> to vector<8x8xbf16>
      %c16 = arith.constant 16 : index
      %c0_56 = arith.constant 0 : index
      %129 = vector.load %arg11[%c16, %c0_56] : memref<32x32xbf16, #tpu.memory_space<vmem>>, vector<8x32xbf16>
      %cst_57 = arith.constant dense<0.000000e+00> : vector<8x32xf32>
      %130 = tpu.matmul %128, %129, %cst_57 {dimension_numbers = #tpu.dot_dimension_numbers<[1], [0], [0], [1], [0, 0, 1, 1], [], []>} : vector<8x8xbf16>, vector<8x32xbf16>, vector<8x32xf32> -> vector<8x32xf32>
      %131 = arith.addf %125, %130 : vector<8x32xf32>
      %132 = vector.extract_strided_slice %112 {offsets = [3, 0, 0], sizes = [1, 8, 8], strides = [1, 1, 1]} : vector<4x8x8xf32> to vector<1x8x8xf32>
      %133 = vector.shape_cast %132 : vector<1x8x8xf32> to vector<8x8xf32>
      %134 = arith.truncf %133 : vector<8x8xf32> to vector<8x8xbf16>
      %c24 = arith.constant 24 : index
      %c0_58 = arith.constant 0 : index
      %135 = vector.load %arg11[%c24, %c0_58] : memref<32x32xbf16, #tpu.memory_space<vmem>>, vector<8x32xbf16>
      %cst_59 = arith.constant dense<0.000000e+00> : vector<8x32xf32>
      %136 = tpu.matmul %134, %135, %cst_59 {dimension_numbers = #tpu.dot_dimension_numbers<[1], [0], [0], [1], [0, 0, 1, 1], [], []>} : vector<8x8xbf16>, vector<8x32xbf16>, vector<8x32xf32> -> vector<8x32xf32>
      %137 = arith.addf %131, %136 : vector<8x32xf32>
      %c0_60 = arith.constant 0 : index
      %c0_61 = arith.constant 0 : index
      %138 = vector.load %arg12[%c0_60, %c0_61] : memref<1x32xf32, #tpu.memory_space<vmem>>, vector<1x32xf32>
      %139 = vector.broadcast %138 : vector<1x32xf32> to vector<8x32xf32>
      %140 = arith.addf %137, %139 : vector<8x32xf32>
      %141 = arith.addf %27, %140 : vector<8x32xf32>
      %c0_62 = arith.constant 0 : index
      %c0_63 = arith.constant 0 : index
      %142 = vector.load %arg22[%c0_62, %c0_63] : memref<8x32xf32, #tpu.memory_space<vmem>>, vector<8x32xf32>
      tpu.vector_store %arg22[%c0_62, %c0_63], %141 {strides = array<i32>} : memref<8x32xf32, #tpu.memory_space<vmem>>, vector<8x32xf32>,
      %c0_64 = arith.constant 0 : index
      %c0_65 = arith.constant 0 : index
      %143 = vector.load %arg13[%c0_64, %c0_65] : memref<1x32xf32, #tpu.memory_space<vmem>>, vector<1x32xf32>
      %c0_66 = arith.constant 0 : index
      %c0_67 = arith.constant 0 : index
      %144 = vector.load %arg14[%c0_66, %c0_67] : memref<1x32xf32, #tpu.memory_space<vmem>>, vector<1x32xf32>
      %cst_68 = arith.constant dense<0.000000e+00> : vector<8xf32>
      %145 = vector.multi_reduction <add>, %141, %cst_68 [1] : vector<8x32xf32> to vector<8xf32>
      %146 = vector.shape_cast %145 : vector<8xf32> to vector<8x1xf32>
      %cst_69 = arith.constant 3.200000e+01 : f32
      %147 = vector.broadcast %cst_69 : f32 to vector<8x1xf32>
      %148 = arith.divf %146, %147 : vector<8x1xf32>
      %149 = arith.mulf %141, %141 : vector<8x32xf32>
      %cst_70 = arith.constant dense<0.000000e+00> : vector<8xf32>
      %150 = vector.multi_reduction <add>, %149, %cst_70 [1] : vector<8x32xf32> to vector<8xf32>
      %151 = vector.shape_cast %150 : vector<8xf32> to vector<8x1xf32>
      %cst_71 = arith.constant 3.200000e+01 : f32
      %152 = vector.broadcast %cst_71 : f32 to vector<8x1xf32>
      %153 = arith.divf %151, %152 : vector<8x1xf32>
      %154 = arith.mulf %148, %148 : vector<8x1xf32>
      %155 = arith.subf %153, %154 : vector<8x1xf32>
      %156 = vector.broadcast %148 : vector<8x1xf32> to vector<8x32xf32>
      %157 = arith.subf %141, %156 : vector<8x32xf32>
      %cst_72 = arith.constant 9.99999974E-6 : f32
      %158 = vector.broadcast %cst_72 : f32 to vector<8x1xf32>
      %159 = arith.addf %155, %158 : vector<8x1xf32>
      %160 = math.rsqrt %159 : vector<8x1xf32>
      %161 = vector.broadcast %160 : vector<8x1xf32> to vector<8x32xf32>
      %162 = arith.mulf %157, %161 : vector<8x32xf32>
      %163 = vector.broadcast %143 : vector<1x32xf32> to vector<8x32xf32>
      %164 = arith.mulf %162, %163 : vector<8x32xf32>
      %165 = vector.broadcast %144 : vector<1x32xf32> to vector<8x32xf32>
      %166 = arith.addf %164, %165 : vector<8x32xf32>
      %167 = arith.truncf %166 : vector<8x32xf32> to vector<8x32xbf16>
      %c0_73 = arith.constant 0 : index
      %c0_74 = arith.constant 0 : index
      %168 = vector.load %arg23[%c0_73, %c0_74] : memref<8x32xbf16, #tpu.memory_space<vmem>>, vector<8x32xbf16>
      tpu.vector_store %arg23[%c0_73, %c0_74], %167 {strides = array<i32>} : memref<8x32xbf16, #tpu.memory_space<vmem>>, vector<8x32xbf16>,
      %cst_75 = arith.constant 0.000000e+00 : f32
      %169 = vector.broadcast %cst_75 : f32 to vector<8x32xf32>
      %c0_76 = arith.constant 0 : index
      %c0_77 = arith.constant 0 : index
      %170 = vector.load %arg24[%c0_76, %c0_77] : memref<8x32xf32, #tpu.memory_space<vmem>>, vector<8x32xf32>
      tpu.vector_store %arg24[%c0_76, %c0_77], %169 {strides = array<i32>} : memref<8x32xf32, #tpu.memory_space<vmem>>, vector<8x32xf32>,
    } else {
    }
    %c0 = arith.constant 0 : index
    %c0_1 = arith.constant 0 : index
    %3 = vector.load %arg23[%c0, %c0_1] : memref<8x32xbf16, #tpu.memory_space<vmem>>, vector<8x32xbf16>
    %c0_2 = arith.constant 0 : index
    %c0_3 = arith.constant 0 : index
    %4 = vector.load %arg15[%c0_2, %c0_3] : memref<32x64xbf16, #tpu.memory_space<vmem>>, vector<32x64xbf16>
    %cst = arith.constant dense<0.000000e+00> : vector<8x64xf32>
    %5 = tpu.matmul %3, %4, %cst {dimension_numbers = #tpu.dot_dimension_numbers<[1], [0], [0], [1], [0, 0, 1, 1], [], []>} : vector<8x32xbf16>, vector<32x64xbf16>, vector<8x64xf32> -> vector<8x64xf32>
    %c0_4 = arith.constant 0 : index
    %c0_5 = arith.constant 0 : index
    %6 = vector.load %arg16[%c0_4, %c0_5] : memref<1x64xf32, #tpu.memory_space<vmem>>, vector<1x64xf32>
    %7 = vector.broadcast %6 : vector<1x64xf32> to vector<8x64xf32>
    %8 = arith.addf %5, %7 : vector<8x64xf32>
    %cst_6 = arith.constant 5.000000e-01 : f32
    %9 = vector.broadcast %cst_6 : f32 to vector<8x64xf32>
    %10 = arith.mulf %9, %8 : vector<8x64xf32>
    %cst_7 = arith.constant 0.707106769 : f32
    %11 = vector.broadcast %cst_7 : f32 to vector<8x64xf32>
    %12 = arith.mulf %8, %11 : vector<8x64xf32>
    %13 = math.erf %12 : vector<8x64xf32>
    %cst_8 = arith.constant 1.000000e+00 : f32
    %14 = vector.broadcast %cst_8 : f32 to vector<8x64xf32>
    %15 = arith.addf %14, %13 : vector<8x64xf32>
    %16 = arith.mulf %10, %15 : vector<8x64xf32>
    %c0_9 = arith.constant 0 : index
    %c0_10 = arith.constant 0 : index
    %17 = vector.load %arg24[%c0_9, %c0_10] : memref<8x32xf32, #tpu.memory_space<vmem>>, vector<8x32xf32>
    %18 = arith.truncf %16 : vector<8x64xf32> to vector<8x64xbf16>
    %c0_11 = arith.constant 0 : index
    %c0_12 = arith.constant 0 : index
    %19 = vector.load %arg17[%c0_11, %c0_12] : memref<64x32xbf16, #tpu.memory_space<vmem>>, vector<64x32xbf16>
    %cst_13 = arith.constant dense<0.000000e+00> : vector<8x32xf32>
    %20 = tpu.matmul %18, %19, %cst_13 {dimension_numbers = #tpu.dot_dimension_numbers<[1], [0], [0], [1], [0, 0, 1, 1], [], []>} : vector<8x64xbf16>, vector<64x32xbf16>, vector<8x32xf32> -> vector<8x32xf32>
    %21 = arith.addf %17, %20 : vector<8x32xf32>
    %c0_14 = arith.constant 0 : index
    %c0_15 = arith.constant 0 : index
    %22 = vector.load %arg24[%c0_14, %c0_15] : memref<8x32xf32, #tpu.memory_space<vmem>>, vector<8x32xf32>
    tpu.vector_store %arg24[%c0_14, %c0_15], %21 {strides = array<i32>} : memref<8x32xf32, #tpu.memory_space<vmem>>, vector<8x32xf32>,
    %c0_i32_16 = arith.constant 0 : i32
    %23 = arith.cmpi eq, %arg1, %c0_i32_16 : i32
    %24 = arith.extui %23 : i1 to i32
    %c0_i32_17 = arith.constant 0 : i32
    %25 = arith.cmpi ne, %24, %c0_i32_17 : i32
    scf.if %25 {
      %c0_18 = arith.constant 0 : index
      %c0_19 = arith.constant 0 : index
      %26 = vector.load %arg22[%c0_18, %c0_19] : memref<8x32xf32, #tpu.memory_space<vmem>>, vector<8x32xf32>
      %c0_20 = arith.constant 0 : index
      %c0_21 = arith.constant 0 : index
      %27 = vector.load %arg24[%c0_20, %c0_21] : memref<8x32xf32, #tpu.memory_space<vmem>>, vector<8x32xf32>
      %28 = arith.addf %26, %27 : vector<8x32xf32>
      %c0_22 = arith.constant 0 : index
      %c0_23 = arith.constant 0 : index
      %29 = vector.load %arg18[%c0_22, %c0_23] : memref<1x32xf32, #tpu.memory_space<vmem>>, vector<1x32xf32>
      %30 = vector.broadcast %29 : vector<1x32xf32> to vector<8x32xf32>
      %31 = arith.addf %28, %30 : vector<8x32xf32>
      %c0_24 = arith.constant 0 : index
      %c0_25 = arith.constant 0 : index
      %32 = vector.load %arg19[%c0_24, %c0_25] : memref<1x32xf32, #tpu.memory_space<vmem>>, vector<1x32xf32>
      %c0_26 = arith.constant 0 : index
      %c0_27 = arith.constant 0 : index
      %33 = vector.load %arg20[%c0_26, %c0_27] : memref<1x32xf32, #tpu.memory_space<vmem>>, vector<1x32xf32>
      %cst_28 = arith.constant dense<0.000000e+00> : vector<8xf32>
      %34 = vector.multi_reduction <add>, %31, %cst_28 [1] : vector<8x32xf32> to vector<8xf32>
      %35 = vector.shape_cast %34 : vector<8xf32> to vector<8x1xf32>
      %cst_29 = arith.constant 3.200000e+01 : f32
      %36 = vector.broadcast %cst_29 : f32 to vector<8x1xf32>
      %37 = arith.divf %35, %36 : vector<8x1xf32>
      %38 = arith.mulf %31, %31 : vector<8x32xf32>
      %cst_30 = arith.constant dense<0.000000e+00> : vector<8xf32>
      %39 = vector.multi_reduction <add>, %38, %cst_30 [1] : vector<8x32xf32> to vector<8xf32>
      %40 = vector.shape_cast %39 : vector<8xf32> to vector<8x1xf32>
      %cst_31 = arith.constant 3.200000e+01 : f32
      %41 = vector.broadcast %cst_31 : f32 to vector<8x1xf32>
      %42 = arith.divf %40, %41 : vector<8x1xf32>
      %43 = arith.mulf %37, %37 : vector<8x1xf32>
      %44 = arith.subf %42, %43 : vector<8x1xf32>
      %45 = vector.broadcast %37 : vector<8x1xf32> to vector<8x32xf32>
      %46 = arith.subf %31, %45 : vector<8x32xf32>
      %cst_32 = arith.constant 9.99999974E-6 : f32
      %47 = vector.broadcast %cst_32 : f32 to vector<8x1xf32>
      %48 = arith.addf %44, %47 : vector<8x1xf32>
      %49 = math.rsqrt %48 : vector<8x1xf32>
      %50 = vector.broadcast %49 : vector<8x1xf32> to vector<8x32xf32>
      %51 = arith.mulf %46, %50 : vector<8x32xf32>
      %52 = vector.broadcast %32 : vector<1x32xf32> to vector<8x32xf32>
      %53 = arith.mulf %51, %52 : vector<8x32xf32>
      %54 = vector.broadcast %33 : vector<1x32xf32> to vector<8x32xf32>
      %55 = arith.addf %53, %54 : vector<8x32xf32>
      %c0_33 = arith.constant 0 : index
      %c0_34 = arith.constant 0 : index
      %c0_35 = arith.constant 0 : index
      %56 = vector.load %arg21[%c0_33, %c0_34, %c0_35] : memref<1x8x32xf32, #tpu.memory_space<vmem>>, vector<1x8x32xf32>
      %57 = vector.shape_cast %56 : vector<1x8x32xf32> to vector<8x32xf32>
      %58 = vector.shape_cast %55 : vector<8x32xf32> to vector<1x8x32xf32>
      tpu.vector_store %arg21[%c0_33, %c0_34, %c0_35], %58 {strides = array<i32>} : memref<1x8x32xf32, #tpu.memory_space<vmem>>, vector<1x8x32xf32>,
    } else {
    }
    return
  }
  func.func @transform_0(%arg0: i32, %arg1: i32) -> (i32, i32, i32) {
    %c0_i32 = arith.constant 0 : i32
    %c0_i32_0 = arith.constant 0 : i32
    %c0_i32_1 = arith.constant 0 : i32
    return %arg0, %c0_i32, %c0_i32_0 : i32, i32, i32
  }
  func.func @transform_1(%arg0: i32, %arg1: i32) -> (i32, i32) {
    %c0_i32 = arith.constant 0 : i32
    %c0_i32_0 = arith.constant 0 : i32
    %c0_i32_1 = arith.constant 0 : i32
    return %c0_i32, %c0_i32_0 : i32, i32
  }
  func.func @transform_2(%arg0: i32, %arg1: i32) -> (i32, i32) {
    %c0_i32 = arith.constant 0 : i32
    %c0_i32_0 = arith.constant 0 : i32
    %c0_i32_1 = arith.constant 0 : i32
    return %c0_i32, %c0_i32_0 : i32, i32
  }
  func.func @transform_3(%arg0: i32, %arg1: i32) -> (i32, i32) {
    %c0_i32 = arith.constant 0 : i32
    %c0_i32_0 = arith.constant 0 : i32
    %c0_i32_1 = arith.constant 0 : i32
    return %c0_i32, %c0_i32_0 : i32, i32
  }
  func.func @transform_4(%arg0: i32, %arg1: i32) -> (i32, i32) {
    %c0_i32 = arith.constant 0 : i32
    %c0_i32_0 = arith.constant 0 : i32
    %c0_i32_1 = arith.constant 0 : i32
    return %c0_i32, %c0_i32_0 : i32, i32
  }
  func.func @transform_5(%arg0: i32, %arg1: i32) -> (i32, i32) {
    %c0_i32 = arith.constant 0 : i32
    %c0_i32_0 = arith.constant 0 : i32
    %c0_i32_1 = arith.constant 0 : i32
    return %c0_i32, %c0_i32_0 : i32, i32
  }
  func.func @transform_6(%arg0: i32, %arg1: i32) -> (i32, i32) {
    %c0_i32 = arith.constant 0 : i32
    %c0_i32_0 = arith.constant 0 : i32
    %c0_i32_1 = arith.constant 0 : i32
    return %c0_i32, %c0_i32_0 : i32, i32
  }
  func.func @transform_7(%arg0: i32, %arg1: i32) -> (i32, i32) {
    %c0_i32 = arith.constant 0 : i32
    %c0_i32_0 = arith.constant 0 : i32
    %c0_i32_1 = arith.constant 0 : i32
    return %c0_i32, %c0_i32_0 : i32, i32
  }
  func.func @transform_8(%arg0: i32, %arg1: i32) -> (i32, i32) {
    %c0_i32 = arith.constant 0 : i32
    %c0_i32_0 = arith.constant 0 : i32
    %c0_i32_1 = arith.constant 0 : i32
    return %c0_i32, %c0_i32_0 : i32, i32
  }
  func.func @transform_9(%arg0: i32, %arg1: i32) -> (i32, i32) {
    %c0_i32 = arith.constant 0 : i32
    %c0_i32_0 = arith.constant 0 : i32
    %c0_i32_1 = arith.constant 0 : i32
    return %c0_i32, %c0_i32_0 : i32, i32
  }
  func.func @transform_10(%arg0: i32, %arg1: i32) -> (i32, i32) {
    %c0_i32 = arith.constant 0 : i32
    %c0_i32_0 = arith.constant 0 : i32
    %c0_i32_1 = arith.constant 0 : i32
    return %c0_i32, %c0_i32_0 : i32, i32
  }
  func.func @transform_11(%arg0: i32, %arg1: i32) -> (i32, i32) {
    %c0_i32 = arith.constant 0 : i32
    %c0_i32_0 = arith.constant 0 : i32
    %c0_i32_1 = arith.constant 0 : i32
    return %c0_i32, %c0_i32_0 : i32, i32
  }
  func.func @transform_12(%arg0: i32, %arg1: i32) -> (i32, i32) {
    %c0_i32 = arith.constant 0 : i32
    %c0_i32_0 = arith.constant 0 : i32
    %c0_i32_1 = arith.constant 0 : i32
    return %c0_i32, %c0_i32_0 : i32, i32
  }
  func.func @transform_13(%arg0: i32, %arg1: i32) -> (i32, i32) {
    %c0_i32 = arith.constant 0 : i32
    %c0_i32_0 = arith.constant 0 : i32
    return %c0_i32, %arg1 : i32, i32
  }
  func.func @transform_14(%arg0: i32, %arg1: i32) -> (i32, i32) {
    %c0_i32 = arith.constant 0 : i32
    %c0_i32_0 = arith.constant 0 : i32
    return %c0_i32, %arg1 : i32, i32
  }
  func.func @transform_15(%arg0: i32, %arg1: i32) -> (i32, i32) {
    %c0_i32 = arith.constant 0 : i32
    %c0_i32_0 = arith.constant 0 : i32
    return %arg1, %c0_i32 : i32, i32
  }
  func.func @transform_16(%arg0: i32, %arg1: i32) -> (i32, i32) {
    %c0_i32 = arith.constant 0 : i32
    %c0_i32_0 = arith.constant 0 : i32
    %c0_i32_1 = arith.constant 0 : i32
    return %c0_i32, %c0_i32_0 : i32, i32
  }
  func.func @transform_17(%arg0: i32, %arg1: i32) -> (i32, i32) {
    %c0_i32 = arith.constant 0 : i32
    %c0_i32_0 = arith.constant 0 : i32
    %c0_i32_1 = arith.constant 0 : i32
    return %c0_i32, %c0_i32_0 : i32, i32
  }
  func.func @transform_18(%arg0: i32, %arg1: i32) -> (i32, i32) {
    %c0_i32 = arith.constant 0 : i32
    %c0_i32_0 = arith.constant 0 : i32
    %c0_i32_1 = arith.constant 0 : i32
    return %c0_i32, %c0_i32_0 : i32, i32
  }
  func.func @transform_19(%arg0: i32, %arg1: i32) -> (i32, i32, i32) {
    %c0_i32 = arith.constant 0 : i32
    %c0_i32_0 = arith.constant 0 : i32
    %c0_i32_1 = arith.constant 0 : i32
    return %arg0, %c0_i32, %c0_i32_0 : i32, i32, i32
  }
}

</mosaic_0001>

<bundles_post_ra>
// kernel: roberta_encoder.2
= control target key start
LH: loop header
LB: loop body
LE: loop exit
PB: predicated region body
PF: predicated region fallthrough
CT: control target
= control target key end

     0   :  { %s3012_s0 = inlined_call_operand.vmem [shape: f32[2,8,32], index: 0, kind: input, shape index: {}, may-alias: {0,17}]   ;;  %s3013_s1 = inlined_call_operand.vmem [shape: f32[1,32], index: 1, kind: input, shape index: {}]   ;;  %s3014_s2 = inlined_call_operand.hbm [shape: f32[1,32], index: 2, kind: input, shape index: {}]   ;;  %s3015_s3 = inlined_call_operand.vmem [shape: bf16[32,32], index: 3, kind: input, shape index: {}]   ;;  %s3016_s4 = inlined_call_operand.hbm [shape: f32[1,32], index: 4, kind: input, shape index: {}]   ;;  %s3017_s5 = inlined_call_operand.vmem [shape: bf16[32,32], index: 5, kind: input, shape index: {}]   ;;  %s3018_s6 = inlined_call_operand.hbm [shape: f32[1,32], index: 6, kind: input, shape index: {}]   ;;  %s3019_s7 = inlined_call_operand.vmem [shape: bf16[32,32], index: 7, kind: input, shape index: {}]   ;;  %s3020_s8 = inlined_call_operand.hbm [shape: f32[1,32], index: 8, kind: input, shape index: {}]   ;;  %s3021_s9 = inlined_call_operand.vmem [shape: bf16[32,32], index: 9, kind: input, shape index: {}]   ;;  %s3022_s10 = inlined_call_operand.hbm [shape: f32[1,32], index: 10, kind: input, shape index: {}]   ;;  %s3023_s11 = inlined_call_operand.vmem [shape: f32[1,32], index: 11, kind: input, shape index: {}]   ;;  %s3024_s12 = inlined_call_operand.vmem [shape: f32[1,32], index: 12, kind: input, shape index: {}]   ;;  %s3025_s13 = inlined_call_operand.hbm [shape: bf16[32,64], index: 13, kind: input, shape index: {}]   ;;  %s3026_s14 = inlined_call_operand.hbm [shape: f32[1,64], index: 14, kind: input, shape index: {}]   ;;  %s3027_s15 = inlined_call_operand.vmem [shape: bf16[64,32], index: 15, kind: input, shape index: {}]   ;;  %s3028_s16 = inlined_call_operand.hbm [shape: f32[1,32], index: 16, kind: input, shape index: {}]   ;;  %s3029_s17 = inlined_call_operand.vmem [shape: f32[2,8,32], index: 17, kind: output, shape index: {}, may-alias: {0,17}]  }
   0x1   :  { %3034 = sst [smem:[#allocation24_spill]] %s3012_s0 }
   0x2   :  { %3035 = sst [smem:[#allocation25_spill]] %s3013_s1 }
   0x3   :  { %3036 = sst [smem:[#allocation26_spill]] %s3016_s4 }
   0x4   :  { %3037 = sst [smem:[#allocation27_spill]] %s3020_s8 }
   0x5   :  { %22 = vsyncpa [#allocation6], 0 }
   0x6   :  { %23 = vsyncpa [#allocation8], 0 }
   0x7   :  { %24 = vsyncpa [#allocation11], 0 }
   0x8   :  { %25 = vsyncpa [#allocation14], 0 }
   0x9   :  { %26 = vsyncpa [#allocation17], 0  ;;  %s2683_s24 = smov 0   ;;  %s2685_s25 = smov 0  }
   0xa   :  { %s2687_s26 = smov 0  }
   0xb LB: > { %3038 = sst [smem:[#allocation23_spill]] %s2576_s26  ;;  %s2578_s27 = smov [#allocation7]   ;;  %s2576_s26 = sphi %s2687_s26, %s32_s26   ;;  %s2572_s25 = sphi %s2685_s25, %s3051_s25   ;;  %s2568_s24 = sphi %s2683_s24, %s3050_s24  }
   0xc   : > { %s482_s28 = sshll.u32 %s2578_s27, 4  ;;  %s1958_s29 = sadd.s32 4294967295, %s2576_s26   ;;  %s483_s28 = int_to_ptr.vmem [resolvable:$true] %s482_s28 }
   0xd   : > { %p1960_p0 = scmp.ge.s32.totalorder %s2576_s26, 1  ;;  %p452_p1 = scmp.lt.s32.totalorder %s2576_s26, 3 }
   0xe   : > { %p2701_p2 = scmp.eq.s32.totalorder %s1958_s29, 0  ;;  %s2579_s18 = smov [#allocation10]  }
   0xf   : > { %p2705_p3 = pnand %p1960_p0, %p452_p1  ;;  %s510_s19 = sshll.u32 %s2579_s18, 4  ;;  %s511_s19 = int_to_ptr.vmem [resolvable:$true] %s510_s19 }
  0x10   : > { %s3039_s0 = scalar_select %p2701_p2, 1, 0 }
  0x11   : > { %s3040_s30 = scalar_select %p2705_p3, 1, 0 }
  0x12   : > { %p2212_p4 = pneg %p2705_p3  ;;  %s2580_s1 = smov [#allocation13]  }
  0x13   : > { %s542_s20 = sshll.u32 %s2580_s1, 4  ;;  %s2337_s23 = scalar_lea.vmem %s483_s28, 16  ;;  %s2717_s20 = int_to_ptr.vmem [resolvable:$true] %s542_s20 }
  0x14   : > { %p2713_p5 = pnand %p2701_p2, %p2212_p4  ;;  %p2338_p7 = scmp.ne.s32.totalorder %s483_s28, %s2337_s23 }
  0x15   : > { %s2344_s27 = scalar_lea.vmem %s483_s28, 32  ;;  %p2345_p10 = scmp.lt.s32.totalorder %s483_s28, %s483_s28 }
  0x16   : > { %p2721_p6 = pneg %p2713_p5  ;;  %p2346_p11 = scmp.lt.s32.totalorder %s2344_s27, %s2337_s23 }
  0x18   : > { %p2340_p8 = pnand %p2338_p7, %p2721_p6  ;;  %p2347_p12 = por %p2346_p11, %p2345_p10 }
  0x1a   : > { %p2341_p9 = pneg %p2340_p8 }
  0x1c   : > { %p2348_p13 = pnand %p2347_p12, %p2341_p9 }
  0x1e   : > { %2351 = shalt.err (!%p2348_p13)
}
  0x1f   : > { %s3043_s4 = sld [smem:[#allocation26_spill]]  ;;  %s2363_s1 = scalar_lea.vmem %s511_s19, 16 }
  0x20   : > { %p2364_p0 = scmp.ne.s32.totalorder %s511_s19, %s2363_s1  ;;  %s2370_s26 = scalar_lea.vmem %s511_s19, 32 }
  0x21   : > { %p2371_p7 = scmp.lt.s32.totalorder %s511_s19, %s511_s19  ;;  %p2372_p8 = scmp.lt.s32.totalorder %s2370_s26, %s2363_s1 }
  0x22   : > { %p2366_p1 = pnand %p2364_p0, %p2721_p6 }
  0x23   : > { %p2373_p2 = por %p2372_p8, %p2371_p7 }
  0x24   : > { %p2367_p4 = pneg %p2366_p1 }
  0x25   : > { %2218 = dma.hbm_to_vmem [thread:$0]  (!%p2713_p5), %s3043_s4, 16, %s483_s28, [#allocation8]  }
  0x26   : > { %p2374_p3 = pnand %p2373_p2, %p2367_p4 }
  0x28   : > { %2377 = shalt.err (!%p2374_p3)
}
  0x29   : > { %s3044_s8 = sld [smem:[#allocation27_spill]]  ;;  %s2389_s28 = scalar_lea.vmem %s2717_s20, 256 }
  0x2a   : > { %p2390_p9 = scmp.ne.s32.totalorder %s2717_s20, %s2389_s28  ;;  %p2397_p12 = scmp.lt.s32.totalorder %s2717_s20, %s2717_s20 }
  0x2b   : > { %p2398_p13 = scmp.lt.s32.totalorder %s2389_s28, %s2389_s28 }
  0x2c   : > { %p2392_p10 = pnand %p2390_p9, %p2721_p6 }
  0x2d   : > { %p2399_p2 = por %p2398_p13, %p2397_p12 }
  0x2e   : > { %p2393_p11 = pneg %p2392_p10 }
  0x2f   : > { %2224 = dma.hbm_to_vmem [thread:$0]  (!%p2713_p5), %s3044_s8, 16, %s511_s19, [#allocation11]  }
  0x30   : > { %p2400_p3 = pnand %p2399_p2, %p2393_p11 }
  0x32   : > { %2403 = shalt.err (!%p2400_p3)
}
  0x33   : > { %s2581_s26 = smov 64   ;;  %s2582_s29 = smov 4  }
  0x34   : > { %2230 = dma.hbm_to_vmem [thread:$0]  (!%p2713_p5), %s3025_s13, 256, %s2717_s20, [#allocation14], %s2581_s26, %s2581_s26, %s2582_s29  }
  0x35   : > { %s44_s1 = sadd.s32 1, %s2572_s25  ;;  %s2583_s23 = smov [#allocation5]  }
  0x36   : > { %p46_p0 = scmp.ge.s32.totalorder %s44_s1, 2  ;;  %s468_s27 = sshll.u32 %s2583_s23, 4  ;;  %s469_s27 = int_to_ptr.vmem [resolvable:$true] %s468_s27 }
  0x37   : > { %s2415_s28 = scalar_lea.vmem %s469_s27, 16  ;;  %s2422_s4 = scalar_lea.vmem %s469_s27, 32 }
  0x38   : > { %s3053_s1 = smov (%p46_p0, %s44_s1), 0  ;;  %p2416_p1 = scmp.ne.s32.totalorder %s469_s27, %s2415_s28 }
  0x39   : > { %p2423_p8 = scmp.lt.s32.totalorder %s469_s27, %s469_s27  ;;  %p2424_p9 = scmp.lt.s32.totalorder %s2422_s4, %s2415_s28 }
  0x3a   : > { %p2418_p4 = pnand %p2416_p1, %p2721_p6 }
  0x3b   : > { %p2425_p10 = por %p2424_p9, %p2423_p8 }
  0x3c   : > { %p2419_p7 = pneg %p2418_p4 }
  0x3e   : > { %p2426_p11 = pnand %p2425_p10, %p2419_p7 }
  0x40   : > { %2429 = shalt.err (!%p2426_p11)
}
  0x41   : > { %2215 = dma.hbm_to_vmem [thread:$0]  (!%p2713_p5), %s3014_s2, 16, %s469_s27, [#allocation6]  }
  0x42   : > { %s2584_s29 = smov [#allocation9]   ;;  %s2585_s19 = smov [#allocation12]  }
  0x43   : > { %s496_s18 = sshll.u32 %s2584_s29, 4  ;;  %s524_s23 = sshll.u32 %s2585_s19, 4  ;;  %s497_s18 = int_to_ptr.vmem [resolvable:$true] %s496_s18  ;;  %s525_s23 = int_to_ptr.vmem [resolvable:$true] %s524_s23 }
  0x44   : > { %s2441_s8 = scalar_lea.vmem %s497_s18, 16  ;;  %s2448_s4 = scalar_lea.vmem %s497_s18, 32 }
  0x45   : > { %p2442_p12 = scmp.ne.s32.totalorder %s497_s18, %s2441_s8  ;;  %p2449_p3 = scmp.lt.s32.totalorder %s497_s18, %s497_s18 }
  0x46   : > { %p2450_p0 = scmp.lt.s32.totalorder %s2448_s4, %s2441_s8 }
  0x47   : > { %p2444_p13 = pnand %p2442_p12, %p2721_p6 }
  0x48   : > { %p2451_p1 = por %p2450_p0, %p2449_p3 }
  0x49   : > { %p2445_p2 = pneg %p2444_p13 }
  0x4b   : > { %p2452_p4 = pnand %p2451_p1, %p2445_p2 }
  0x4d   : > { %2455 = shalt.err (!%p2452_p4)
}
  0x4e   : > { %2221 = dma.hbm_to_vmem [thread:$0]  (!%p2713_p5), %s3018_s6, 16, %s497_s18, [#allocation8]  }
  0x4f   : > { %s2467_s20 = scalar_lea.vmem %s525_s23, 16  ;;  %s2474_s26 = scalar_lea.vmem %s525_s23, 32 }
  0x50   : > { %p2468_p7 = scmp.ne.s32.totalorder %s525_s23, %s2467_s20  ;;  %p2475_p10 = scmp.lt.s32.totalorder %s525_s23, %s525_s23 }
  0x51   : > { %p2476_p11 = scmp.lt.s32.totalorder %s2474_s26, %s2467_s20 }
  0x52   : > { %p2470_p8 = pnand %p2468_p7, %p2721_p6 }
  0x53   : > { %p2477_p12 = por %p2476_p11, %p2475_p10 }
  0x54   : > { %p2471_p9 = pneg %p2470_p8 }
  0x56   : > { %p2478_p13 = pnand %p2477_p12, %p2471_p9 }
  0x58   : > { %2481 = shalt.err (!%p2478_p13)
}
  0x59   : > { %2227 = dma.hbm_to_vmem [thread:$0]  (!%p2713_p5), %s3022_s10, 16, %s525_s23, [#allocation11]  }
  0x5a   : > { %s2586_s18 = smov [#allocation15]   ;;  %s2587_s4 = smov [#allocation16]  }
  0x5b   : > { %s558_s19 = sshll.u32 %s2586_s18, 4  ;;  %s578_s28 = sshll.u32 %s2587_s4, 4  ;;  %s559_s19 = int_to_ptr.vmem [resolvable:$true] %s558_s19  ;;  %s579_s28 = int_to_ptr.vmem [resolvable:$true] %s578_s28 }
  0x5c   : > { %s2493_s27 = scalar_lea.vmem %s559_s19, 16  ;;  %s2500_s20 = scalar_lea.vmem %s559_s19, 32 }
  0x5d   : > { %p2494_p2 = scmp.ne.s32.totalorder %s559_s19, %s2493_s27  ;;  %p2501_p1 = scmp.lt.s32.totalorder %s559_s19, %s559_s19 }
  0x5e   : > { %p2502_p4 = scmp.lt.s32.totalorder %s2500_s20, %s2493_s27 }
  0x5f   : > { %p2496_p3 = pnand %p2494_p2, %p2721_p6 }
  0x60   : > { %p2503_p7 = por %p2502_p4, %p2501_p1 }
  0x61   : > { %p2497_p0 = pneg %p2496_p3 }
  0x63   : > { %p2504_p8 = pnand %p2503_p7, %p2497_p0 }
  0x65   : > { %2507 = shalt.err (!%p2504_p8)
}
  0x66   : > { %2233 = dma.hbm_to_vmem [thread:$0]  (!%p2713_p5), %s3026_s14, 16, %s559_s19, [#allocation14]  }
  0x67   : > { %s2519_s8 = scalar_lea.vmem %s579_s28, 16  ;;  %s2526_s29 = scalar_lea.vmem %s579_s28, 32 }
  0x68   : > { %p2520_p9 = scmp.ne.s32.totalorder %s579_s28, %s2519_s8  ;;  %p2527_p12 = scmp.lt.s32.totalorder %s579_s28, %s579_s28 }
  0x69   : > { %p2528_p13 = scmp.lt.s32.totalorder %s2526_s29, %s2519_s8 }
  0x6a   : > { %p2522_p10 = pnand %p2520_p9, %p2721_p6 }
  0x6b   : > { %p2529_p2 = por %p2528_p13, %p2527_p12 }
  0x6c   : > { %p2523_p11 = pneg %p2522_p10 }
  0x6e   : > { %p2530_p3 = pnand %p2529_p2, %p2523_p11 }
  0x70   : > { %2533 = shalt.err (!%p2530_p3)
}
  0x71   : > { %2236 = dma.hbm_to_vmem [thread:$0]  (!%p2713_p5), %s3028_s16, 16, %s579_s28, [#allocation17]  }
  0x72   : > { %p3045_p0 = scmp.ne.s32.totalorder %s3040_s30, 0 }
  0x73   : > { %p3046_p1 = scmp.ne.s32.totalorder (!%p3045_p0), %s3039_s0, 0 }
  0x74   : > { %598 = sbr.rel (%p3045_p0) target bundleno = 2195 (0x893), region = 88 }
  0x79   : > { %2547 = dma.done.wait (%p3046_p1), [#allocation6], 16  }
  0x7a   : > { %2549 = vsyncadd (%p3046_p1), [#allocation6], 4294967280 }
  0x7b   : > { %2551 = dma.done.wait (%p3046_p1), [#allocation8], 32  }
  0x7c   : > { %2553 = vsyncadd (%p3046_p1), [#allocation8], 4294967264 }
  0x7d   : > { %2555 = dma.done.wait (%p3046_p1), [#allocation11], 32  }
  0x7e   : > { %2557 = vsyncadd (%p3046_p1), [#allocation11], 4294967264 }
  0x7f   : > { %2559 = dma.done.wait (%p3046_p1), [#allocation14], 272  }
  0x80   : > { %2561 = vsyncadd (%p3046_p1), [#allocation14], 4294967024 }
  0x81   : > { %2563 = dma.done.wait (%p3046_p1), [#allocation17], 16  }
  0x82   : > { %2565 = vsyncadd (%p3046_p1), [#allocation17], 4294967280  ;;  %p681_p5 = scmp.lt.s32.totalorder %s2568_s24, 1  ;;  %s3047_s19 = sld [smem:[#allocation24_spill]]  ;;  %vm703_vm0 = vcmask 261120   ;;  %v2292_v4 = vld [vmem:[%s3015_s3 + $0x8] sm:$0xff]  }
  0x83   : > { %v2293_v5 = vld [vmem:[%s3019_s7 + $0x8] sm:$0xff]   ;;  %v2588_v6 = vmov 0.0   ;;  %v2294_v7 = vld [vmem:[%s3015_s3] sm:$0xff]   ;;  %vm2589_vm1 = vmmov 0   ;;  %s3048_s22 = sld [smem:[#allocation25_spill]]  ;;  %vm969_vm2 = vcmask 64512  }
  0x84   : > { %s3055_s24 = smov (!%p681_p5, %s2568_s24), 1  ;;  %2064 = vmatprep.subr.bf16.mxu1 %v2588_v6  ;;  %1629 = vst.msk [vmem:[#allocation4] sm:$0xff] %vm703_vm0, %v2588_v6  ;;  %2080 = vmatprep.subr.bf16.mxu0 %v2588_v6  ;;  %v2295_v8 = vld [vmem:[%s3019_s7] sm:$0xff]   ;;  %v1983_v20 = vld [vmem:[#allocation5] ss:$0 sm:$0xff]  ;;  %v2296_v23 = vld [vmem:[%s3017_s5 + $0x8] sm:$0xff]  }
  0x85   : > { %s1980_s30 = sshll.u32 %s3055_s24, 3  ;;  %2065 = vmatpush3.bf16.msra.mxu1 %v2292_v4  ;;  %2081 = vmatpush3.bf16.msra.mxu0 %v2293_v5  ;;  %v2297_v25 = vld [vmem:[%s3017_s5] sm:$0xff]   ;;  %v1988_v34 = vld [vmem:[#allocation9] ss:$0 sm:$0xff]  ;;  %v1984_v37 = vld [vmem:[#allocation7] ss:$0 sm:$0xff] }
  0x86   : > { %2066 = vmatprep.subr.bf16.mxu1 %v2588_v6  ;;  %2082 = vmatprep.subr.bf16.mxu0 %v2588_v6  ;;  %s2590_s20 = smov 112   ;;  %s2591_s26 = smov 120   ;;  %v1992_v51 = vld [vmem:[#allocation10] ss:$0 sm:$0xff]  ;;  %vm1209_vm3 = vcmask 1043456   ;;  %vm1627_vm4 = vcmask 257024  }
  0x87   : > { %2068 = vmatprep.mubr.msk.bf16.mxu1 %vm2589_vm1, %v2588_v6  ;;  %2084 = vmatprep.mubr.msk.bf16.mxu0 %vm2589_vm1, %v2588_v6  ;;  %s2592_s23 = smov 104   ;;  %vm1737_vm5 = vcmask 523264   ;;  %s694_s27 = scalar_lea.vmem %s3029_s17, %s1980_s30 }
  0x88   : > { %s684_s28 = scalar_lea.vmem %s3047_s19, %s1980_s30 }
  0x89   : > { %v2821_v0 = vld [vmem:[%s684_s28] sm:$0xff]  ;;  %2067 = vmatpush3.bf16.msra.mxu1 %v2294_v7  ;;  %2083 = vmatpush3.bf16.msra.mxu0 %v2295_v8 }
  0x8a   : > { %v704_v1 = vsel %vm703_vm0, %v2821_v0, 0.0  ;;  %v709_v2 = vmul.f32 %v2821_v0, %v2821_v0  ;;  %2072 = vmatprep.subr.bf16.mxu1 %v2588_v6  ;;  %2094 = vmatprep.subr.bf16.mxu0 %v2588_v6  ;;  %v1982_v18 = vld [vmem:[%s3048_s22] ss:$0 sm:$0xff] }
  0x8b   : > { %705 = vadd.xlane.f32.xlu0 %v704_v1 }
  0x8c   : > { %v710_v3 = vsel %vm703_vm0, %v709_v2, 0.0 }
  0x8f   : > { %711 = vadd.xlane.f32.xlu0 %v710_v3 }
 0x114   : > { %v706_v9 = vpop.xlane.xlu0 %705 }
 0x115   : > { %v708_v10 = vmul.f32 0.03125, %v706_v9 }
 0x117   : > { %v714_v12 = vmul.f32 %v708_v10, %v708_v10  ;;  %v716_v16 = vsub.f32 %v2821_v0, %v708_v10 }
 0x118   : > { %v712_v11 = vpop.xlane.xlu0 %711 }
 0x119   : > { %v713_v13 = vmul.f32 0.03125, %v712_v11 }
 0x11b   : > { %v715_v14 = vsub.f32 %v713_v13, %v714_v12 }
 0x11d   : > { %v717_v15 = vadd.f32 1e-05, %v715_v14 }
 0x11f   : > { %2304 = vrsqrt.f32 %v717_v15 }
 0x12c   : > { %v2305_v17 = vpop.eup %2304 }
 0x12d   : > { %v719_v19 = vmul.f32 %v2305_v17, %v716_v16 }
 0x12f   : > { %v726_v21 = vmul.f32 %v1982_v18, %v719_v19 }
 0x131   : > { %v733_v22 = vadd.f32 %v1983_v20, %v726_v21 }
 0x133   : > { %v734_v24 = vpack.c.bf16 %v733_v22, %v733_v22 }
 0x135   : > { %2069 = vmatmul.mubr.msk.bf16.vlgmr.msra.gmra.mxu1 %vm703_vm0, %v734_v24  ;;  %2085 = vmatmul.mubr.msk.bf16.vlgmr.msra.gmra.mxu0 %vm703_vm0, %v734_v24 }
 0x136   : > { %2073 = vmatpush3.bf16.msra.mxu1 %v2296_v23  ;;  %2076 = vmatprep.mubr.msk.bf16.mxu1 %vm2589_vm1, %v2588_v6 }
 0x137   : > { %2074 = vmatprep.subr.bf16.mxu1 %v2588_v6  ;;  %2096 = vmatprep.mubr.msk.bf16.mxu0 %vm2589_vm1, %v2588_v6 }
 0x13a   : > { %2075 = vmatpush3.bf16.msra.mxu1 %v2297_v25 }
 0x13b   : > { %2088 = vmatprep.subr.bf16.mxu1 %v2588_v6 }
 0x13d   : > { %2077 = vmatmul.mubr.msk.bf16.vlgmr.msra.gmra.mxu1 %vm703_vm0, %v734_v24 }
 0x13e   : > { %2090 = vmatprep.mubr.msk.bf16.mxu1 %vm2589_vm1, %v2588_v6 }
 0x1f5   : > { %v795_v26 = vpop.f32.mrf.mxu1  ;;  %v921_v27 = vpop.f32.mrf.mxu0 }
 0x1f6   : > { %v796_v41 = vadd.f32 %v1984_v37, %v795_v26  ;;  %v2888_v53 = vadd.f32 %v1992_v51, %v921_v27 }
 0x1f7   : > { %v2070_v28 = vpop.f32.mrf.mxu1  ;;  %v2086_v29 = vpop.f32.mrf.mxu0 }
 0x1f8   : > { %v937_v44 = vpack.c.bf16 %v796_v41, %v796_v41  ;;  %v965_v58 = vpack.c.bf16 %v2888_v53, %v2888_v53 }
 0x1f9   : > { %v798_v30 = vpop.f32.mrf.mxu1  ;;  %v924_v31 = vpop.f32.mrf.mxu0 }
 0x1fa   : > { %v1211_v61 = vsel %vm1209_vm3, %v965_v58, 0 }
 0x1fb   : > { %v2071_v32 = vpop.f32.mrf.mxu1  ;;  %v2087_v33 = vpop.f32.mrf.mxu0 }
 0x1fd   : > { %v858_v35 = vpop.f32.mrf.mxu1 }
 0x1fe   : > { %v859_v36 = vadd.f32 %v1988_v34, %v858_v35 }
 0x1ff   : > { %v2078_v38 = vpop.f32.mrf.mxu1 }
 0x200   : > { %945 = vrot.lane.b32.xlu0 %v859_v36, %s2590_s20  ;;  %942 = vrot.lane.b32.xlu1 %v859_v36, %s2591_s26  ;;  %v951_v39 = vpack.c.bf16 %v859_v36, %v859_v36 }
 0x201   : > { %v861_v40 = vpop.f32.mrf.mxu1 }
 0x202   : > { %v974_v42 = vsel %vm969_vm2, %v951_v39, 0 }
 0x203   : > { %v2079_v43 = vpop.f32.mrf.mxu1  ;;  %2089 = vmatpush3.bf16.xpose.msra.mxu1 %v974_v42 }
 0x204   : > { %928 = vrot.lane.b32.xlu1 %v796_v41, %s2591_s26  ;;  %2100 = vmatprep.subr.bf16.mxu1 %v2588_v6 }
 0x208   : > { %948 = vrot.lane.b32.xlu1 %v859_v36, %s2592_s23 }
 0x20a   : > { %2091 = vmatmul.mubr.msk.bf16.vlgmr.msra.gmra.mxu1 %vm969_vm2, %v937_v44 }
 0x20b   : > { %2102 = vmatprep.mubr.msk.bf16.mxu1 %vm2589_vm1, %v2588_v6 }
 0x20c   : > { %931 = vrot.lane.b32.xlu1 %v796_v41, %s2590_s20 }
 0x210   : > { %934 = vrot.lane.b32.xlu1 %v796_v41, %s2592_s23 }
 0x272   : > { %v946_v45 = vpop.permute.xlu0 %945  ;;  %v943_v46 = vpop.permute.xlu1 %942 }
 0x273   : > { %v953_v47 = vpack.c.bf16 %v946_v45, %v946_v45  ;;  %v952_v48 = vpack.c.bf16 %v943_v46, %v943_v46 }
 0x275   : > { %v1066_v49 = vsel %vm969_vm2, %v953_v47, 0  ;;  %v1020_v50 = vsel %vm969_vm2, %v952_v48, 0 }
 0x276   : > { %2095 = vmatpush3.bf16.xpose.msra.mxu0 %v1020_v50  ;;  %v929_v52 = vpop.permute.xlu1 %928  ;;  %2101 = vmatpush3.bf16.xpose.msra.mxu1 %v1066_v49 }
 0x277   : > { %2106 = vmatprep.subr.bf16.mxu0 %v2588_v6  ;;  %2112 = vmatprep.subr.bf16.mxu1 %v2588_v6  ;;  %v938_v55 = vpack.c.bf16 %v929_v52, %v929_v52 }
 0x27a   : > { %v949_v54 = vpop.permute.xlu1 %948 }
 0x27b   : > { %v954_v56 = vpack.c.bf16 %v949_v54, %v949_v54 }
 0x27d   : > { %v1112_v57 = vsel %vm969_vm2, %v954_v56, 0  ;;  %2097 = vmatmul.mubr.msk.bf16.vlgmr.msra.gmra.mxu0 %vm969_vm2, %v938_v55 }
 0x27e   : > { %2107 = vmatpush3.bf16.xpose.msra.mxu0 %v1112_v57  ;;  %v932_v59 = vpop.permute.xlu1 %931  ;;  %2108 = vmatprep.mubr.msk.bf16.mxu0 %vm2589_vm1, %v2588_v6 }
 0x27f   : > { %v939_v60 = vpack.c.bf16 %v932_v59, %v932_v59  ;;  %2118 = vmatprep.subr.bf16.mxu0 %v2588_v6 }
 0x281   : > { %2103 = vmatmul.mubr.msk.bf16.vlgmr.msra.gmra.mxu1 %vm969_vm2, %v939_v60 }
 0x282   : > { %2113 = vmatpush3.bf16.msra.mxu1 %v1211_v61  ;;  %v935_v62 = vpop.permute.xlu1 %934  ;;  %2114 = vmatprep.mubr.msk.bf16.mxu1 %vm2589_vm1, %v2588_v6 }
 0x283   : > { %v940_v63 = vpack.c.bf16 %v935_v62, %v935_v62  ;;  %2124 = vmatprep.subr.bf16.mxu1 %v2588_v6 }
 0x285   : > { %2109 = vmatmul.mubr.msk.bf16.vlgmr.msra.gmra.mxu0 %vm969_vm2, %v940_v63 }
 0x286   : > { %2120 = vmatprep.mubr.msk.bf16.mxu0 %vm2589_vm1, %v2588_v6 }
 0x2ca   : > { %v1010_v1 = vpop.f32.mrf.mxu1 }
 0x2cb   : > { %v1154_v2 = vmul.f32 0.35355338, %v1010_v1 }
 0x2cc   : > { %v2092_v3 = vpop.f32.mrf.mxu1 }
 0x2cd   : > { %v1158_v4 = vsel %vm969_vm2, %v1154_v2, -inf }
 0x2ce   : > { %1159 = vmax.xlane.f32.xlu1 %v1158_v4  ;;  %v1013_v5 = vpop.f32.mrf.mxu1 }
 0x2d0   : > { %v2093_v7 = vpop.f32.mrf.mxu1 }
 0x2d1   : > { %v1392_v7 = vld [vmem:[%s3021_s9] sm:$0xf] }
 0x33d   : > { %v1056_v8 = vpop.f32.mrf.mxu0 }
 0x33e   : > { %v1155_v9 = vmul.f32 0.35355338, %v1056_v8 }
 0x33f   : > { %v2098_v10 = vpop.f32.mrf.mxu0 }
 0x340   : > { %v1161_v11 = vsel %vm969_vm2, %v1155_v9, -inf  ;;  %v1445_v10 = vsel %vm1209_vm3, %v1392_v7, 0 }
 0x341   : > { %1162 = vmax.xlane.f32.xlu0 %v1161_v11  ;;  %v1059_v12 = vpop.f32.mrf.mxu0  ;;  %v1102_v13 = vpop.f32.mrf.mxu1  ;;  %v1394_v11 = vld [vmem:[%s3021_s9 + $0x4] sm:$0xf] }
 0x342   : > { %v1156_v14 = vmul.f32 0.35355338, %v1102_v13  ;;  %v1399_v12 = vsel %vm1209_vm3, %v1394_v11, 0  ;;  %v1537_v13 = vld [vmem:[%s3021_s9 + $0xc] sm:$0xf] }
 0x343   : > { %v2099_v15 = vpop.f32.mrf.mxu0  ;;  %v2104_v16 = vpop.f32.mrf.mxu1 }
 0x344   : > { %v1164_v17 = vsel %vm969_vm2, %v1156_v14, -inf  ;;  %v1542_v16 = vsel %vm1209_vm3, %v1537_v13, 0 }
 0x345   : > { %v1148_v18 = vpop.f32.mrf.mxu0  ;;  %1165 = vmax.xlane.f32.xlu1 %v1164_v17  ;;  %v1105_v19 = vpop.f32.mrf.mxu1 }
 0x346   : > { %v1157_v20 = vmul.f32 0.35355338, %v1148_v18 }
 0x347   : > { %v2105_v21 = vpop.f32.mrf.mxu1  ;;  %v2110_v22 = vpop.f32.mrf.mxu0 }
 0x348   : > { %v1167_v23 = vsel %vm969_vm2, %v1157_v20, -inf }
 0x349   : > { %v1151_v24 = vpop.f32.mrf.mxu0  ;;  %1168 = vmax.xlane.f32.xlu1 %v1167_v23 }
 0x34b   : > { %v2111_v25 = vpop.f32.mrf.mxu0 }
 0x357   : > { %v1160_v26 = vpop.xlane.xlu1 %1159 }
 0x358   : > { %v1170_v27 = vsub.f32 %v1154_v2, %v1160_v26 }
 0x35a   : > { %v1174_v28 = vmul.f32 1.442695, %v1170_v27 }
 0x35c   : > { %2306 = vpow2.f32 %v1174_v28 }
 0x369   : > { %v2307_v29 = vpop.eup %2306 }
 0x36a   : > { %v1182_v30 = vsel %vm969_vm2, %v2307_v29, 0.0 }
 0x36b   : > { %1183 = vadd.xlane.f32.xlu0 %v1182_v30 }
 0x3ca   : > { %v1163_v31 = vpop.xlane.xlu0 %1162 }
 0x3cb   : > { %v1171_v32 = vsub.f32 %v1155_v9, %v1163_v31 }
 0x3cd   : > { %v1176_v33 = vmul.f32 1.442695, %v1171_v32 }
 0x3ce   : > { %v1166_v34 = vpop.xlane.xlu1 %1165 }
 0x3cf   : > { %2308 = vpow2.f32 %v1176_v33  ;;  %v1172_v35 = vsub.f32 %v1156_v14, %v1166_v34 }
 0x3d1   : > { %v1178_v36 = vmul.f32 1.442695, %v1172_v35 }
 0x3d2   : > { %v1169_v42 = vpop.xlane.xlu1 %1168 }
 0x3d3   : > { %2310 = vpow2.f32 %v1178_v36  ;;  %v1173_v43 = vsub.f32 %v1157_v20, %v1169_v42  ;;  %v1488_v20 = vld [vmem:[%s3021_s9 + $0x8] sm:$0xf] }
 0x3d4   : > { %v1493_v23 = vsel %vm1209_vm3, %v1488_v20, 0  ;;  %v2303_v20 = vld [vmem:[%s3027_s15] sm:$0xff]  }
 0x3d5   : > { %v1180_v44 = vmul.f32 1.442695, %v1173_v43 }
 0x3dc   : > { %v2309_v37 = vpop.eup %2308 }
 0x3dd   : > { %v1185_v38 = vsel %vm969_vm2, %v2309_v37, 0.0 }
 0x3de   : > { %1186 = vadd.xlane.f32.xlu1 %v1185_v38 }
 0x3e0   : > { %v2311_v39 = vpop.eup %2310 }
 0x3e1   : > { %v1188_v40 = vsel %vm969_vm2, %v2311_v39, 0.0 }
 0x3e2   : > { %1189 = vadd.xlane.f32.xlu0 %v1188_v40 }
 0x3ef   : > { %959 = vrot.lane.b32.xlu1 %v2888_v53, %s2590_s20 }
 0x3f4   : > { %v1184_v41 = vpop.xlane.xlu0 %1183 }
 0x3f5   : > { %2312 = vrcp.f32 %v1184_v41 }
 0x3f6   : > { %2314 = vpow2.f32 %v1180_v44 }
 0x3f8   : > { %956 = vrot.lane.b32.xlu0 %v2888_v53, %s2591_s26 }
 0x402   : > { %v2313_v45 = vpop.eup %2312 }
 0x403   : > { %v1198_v46 = vmul.f32 %v2313_v45, %v2307_v29  ;;  %v2315_v48 = vpop.eup %2314 }
 0x404   : > { %v1191_v49 = vsel %vm969_vm2, %v2315_v48, 0.0 }
 0x405   : > { %v1202_v47 = vpack.c.bf16 %v1198_v46, %v1198_v46 }
 0x407   : > { %2115 = vmatmul.mubr.msk.bf16.vlgmr.msra.gmra.mxu1 %vm969_vm2, %v1202_v47 }
 0x408   : > { %2126 = vmatprep.mubr.msk.bf16.mxu1 %vm2589_vm1, %v2588_v6 }
 0x413   : > { %1192 = vadd.xlane.f32.xlu1 %v1191_v49 }
 0x424   : > { %962 = vrot.lane.b32.xlu1 %v2888_v53, %s2592_s23 }
 0x467   : > { %v1187_v50 = vpop.xlane.xlu1 %1186 }
 0x468   : > { %2316 = vrcp.f32 %v1187_v50 }
 0x46b   : > { %v1190_v51 = vpop.xlane.xlu0 %1189  ;;  %v960_v52 = vpop.permute.xlu1 %959 }
 0x46c   : > { %2318 = vrcp.f32 %v1190_v51  ;;  %v967_v54 = vpack.c.bf16 %v960_v52, %v960_v52  ;;  %v2008_v52 = vld [vmem:[#allocation12] ss:$0 sm:$0xff] }
 0x46e   : > { %v1303_v55 = vsel %vm1209_vm3, %v967_v54, 0 }
 0x46f   : > { %v957_v56 = vpop.permute.xlu0 %956  ;;  %2125 = vmatpush3.bf16.msra.mxu1 %v1303_v55 }
 0x470   : > { %v966_v57 = vpack.c.bf16 %v957_v56, %v957_v56  ;;  %2136 = vmatprep.subr.bf16.mxu1 %v2588_v6 }
 0x472   : > { %v1257_v58 = vsel %vm1209_vm3, %v966_v57, 0 }
 0x473   : > { %2119 = vmatpush3.bf16.msra.mxu0 %v1257_v58 }
 0x474   : > { %2130 = vmatprep.subr.bf16.mxu0 %v2588_v6 }
 0x475   : > { %v2317_v59 = vpop.eup %2316 }
 0x476   : > { %v1199_v53 = vmul.f32 %v2317_v59, %v2309_v37 }
 0x478   : > { %v1203_v60 = vpack.c.bf16 %v1199_v53, %v1199_v53 }
 0x479   : > { %v2319_v61 = vpop.eup %2318 }
 0x47a   : > { %2121 = vmatmul.mubr.msk.bf16.vlgmr.msra.gmra.mxu0 %vm969_vm2, %v1203_v60  ;;  %v1200_v62 = vmul.f32 %v2319_v61, %v2311_v39 }
 0x47b   : > { %2132 = vmatprep.mubr.msk.bf16.mxu0 %vm2589_vm1, %v2588_v6 }
 0x47c   : > { %v1204_v63 = vpack.c.bf16 %v1200_v62, %v1200_v62  ;;  %v2298_v62 = vld [vmem:[#allocation13 + $0x8] sm:$0xff]  }
 0x47e   : > { %2127 = vmatmul.mubr.msk.bf16.vlgmr.msra.gmra.mxu1 %vm969_vm2, %v1204_v63  ;;  %v2299_v63 = vld [vmem:[#allocation13] sm:$0xff]  }
 0x47f   : > { %2138 = vmatprep.mubr.msk.bf16.mxu1 %vm2589_vm1, %v2588_v6  ;;  %2137 = vmatpush3.bf16.msra.mxu1 %v1399_v12  ;;  %v2010_v12 = vld [vmem:[%s3024_s12] ss:$0 sm:$0xff] }
 0x480   : > { %2148 = vmatprep.subr.bf16.mxu1 %v2588_v6 }
 0x49c   : > { %v1193_v1 = vpop.xlane.xlu1 %1192 }
 0x49d   : > { %2320 = vrcp.f32 %v1193_v1 }
 0x4a0   : > { %v963_v2 = vpop.permute.xlu1 %962 }
 0x4a1   : > { %v968_v3 = vpack.c.bf16 %v963_v2, %v963_v2 }
 0x4a3   : > { %v1349_v4 = vsel %vm1209_vm3, %v968_v3, 0 }
 0x4a4   : > { %2131 = vmatpush3.bf16.msra.mxu0 %v1349_v4 }
 0x4a5   : > { %2142 = vmatprep.subr.bf16.mxu0 %v2588_v6 }
 0x4aa   : > { %v2321_v5 = vpop.eup %2320 }
 0x4ab   : > { %v1201_v8 = vmul.f32 %v2321_v5, %v2315_v48 }
 0x4ad   : > { %v1205_v9 = vpack.c.bf16 %v1201_v8, %v1201_v8 }
 0x4af   : > { %2133 = vmatmul.mubr.msk.bf16.vlgmr.msra.gmra.mxu0 %vm969_vm2, %v1205_v9 }
 0x4b0   : > { %2143 = vmatpush3.bf16.msra.mxu0 %v1445_v10  ;;  %2144 = vmatprep.mubr.msk.bf16.mxu0 %vm2589_vm1, %v2588_v6  ;;  %v2009_v10 = vld [vmem:[%s3023_s11] ss:$0 sm:$0xff] }
 0x4b1   : > { %2154 = vmatprep.subr.bf16.mxu0 %v2588_v6 }
 0x4c7   : > { %v1247_v14 = vpop.f32.mrf.mxu1 }
 0x4c8   : > { %v1391_v15 = vpack.c.bf16 %v1247_v14, %v1247_v14 }
 0x4c9   : > { %v2116_v17 = vpop.f32.mrf.mxu1 }
 0x4ca   : > { %2145 = vmatmul.mubr.msk.bf16.vlgmr.msra.gmra.mxu0 %vm969_vm2, %v1391_v15  ;;  %v2300_v17 = vld [vmem:[%s3027_s15 + $0x18] sm:$0xff]  }
 0x4cb   : > { %v1250_v18 = vpop.f32.mrf.mxu1  ;;  %2155 = vmatpush3.bf16.msra.mxu0 %v1542_v16  ;;  %2156 = vmatprep.mubr.msk.bf16.mxu0 %vm2589_vm1, %v2588_v6 }
 0x4cc   : > { %2168 = vmatprep.subr.bf16.mxu0 %v2588_v6  ;;  %v2301_v18 = vld [vmem:[%s3027_s15 + $0x10] sm:$0xff]  }
 0x4cd   : > { %v2117_v19 = vpop.f32.mrf.mxu1 }
 0x4ce   : > { %v2302_v19 = vld [vmem:[%s3027_s15 + $0x8] sm:$0xff]  }
 0x53a   : > { %v1293_v21 = vpop.f32.mrf.mxu0 }
 0x53b   : > { %v1393_v22 = vpack.c.bf16 %v1293_v21, %v1293_v21  ;;  %v2011_v21 = vld [vmem:[#allocation15] ss:$0 sm:$0xff] }
 0x53c   : > { %v2122_v24 = vpop.f32.mrf.mxu0 }
 0x53d   : > { %2139 = vmatmul.mubr.msk.bf16.vlgmr.msra.gmra.mxu1 %vm969_vm2, %v1393_v22 }
 0x53e   : > { %v1296_v25 = vpop.f32.mrf.mxu0  ;;  %v1339_v26 = vpop.f32.mrf.mxu1  ;;  %2149 = vmatpush3.bf16.msra.mxu1 %v1493_v23  ;;  %2150 = vmatprep.mubr.msk.bf16.mxu1 %vm2589_vm1, %v2588_v6 }
 0x53f   : > { %2160 = vmatprep.subr.bf16.mxu1 %v2588_v6  ;;  %v1487_v30 = vpack.c.bf16 %v1339_v26, %v1339_v26 }
 0x540   : > { %v2123_v27 = vpop.f32.mrf.mxu0  ;;  %v2128_v28 = vpop.f32.mrf.mxu1 }
 0x542   : > { %v1342_v29 = vpop.f32.mrf.mxu1 }
 0x544   : > { %v2129_v31 = vpop.f32.mrf.mxu1 }
 0x545   : > { %2151 = vmatmul.mubr.msk.bf16.vlgmr.msra.gmra.mxu1 %vm969_vm2, %v1487_v30 }
 0x546   : > { %2164 = vmatprep.mubr.msk.bf16.mxu1 %vm2589_vm1, %v2588_v6  ;;  %2161 = vmatpush3.bf16.msra.mxu1 %v2298_v62 }
 0x547   : > { %2162 = vmatprep.subr.bf16.mxu1 %v2588_v6 }
 0x54a   : > { %2163 = vmatpush3.bf16.msra.mxu1 %v2299_v63 }
 0x56f   : > { %v1385_v32 = vpop.f32.mrf.mxu0 }
 0x570   : > { %v1536_v33 = vpack.c.bf16 %v1385_v32, %v1385_v32  ;;  %v1703_v32 = vld [vmem:[#allocation4] sm:$0xff] }
 0x571   : > { %v2134_v34 = vpop.f32.mrf.mxu0 }
 0x572   : > { %2157 = vmatmul.mubr.msk.bf16.vlgmr.msra.gmra.mxu0 %vm969_vm2, %v1536_v33 }
 0x573   : > { %v1388_v35 = vpop.f32.mrf.mxu0  ;;  %2176 = vmatprep.mubr.msk.bf16.mxu0 %vm2589_vm1, %v2588_v6  ;;  %2169 = vmatpush3.bf16.msra.mxu0 %v2300_v17 }
 0x574   : > { %2170 = vmatprep.subr.bf16.mxu0 %v2588_v6 }
 0x575   : > { %v2135_v36 = vpop.f32.mrf.mxu0 }
 0x577   : > { %2171 = vmatpush3.bf16.msra.mxu0 %v2301_v18 }
 0x578   : > { %2172 = vmatprep.subr.bf16.mxu0 %v2588_v6 }
 0x57b   : > { %2173 = vmatpush3.bf16.msra.mxu0 %v2302_v19 }
 0x57c   : > { %2174 = vmatprep.subr.bf16.mxu0 %v2588_v6 }
 0x57f   : > { %2175 = vmatpush3.bf16.msra.mxu0 %v2303_v20 }
 0x58a   : > { %v1481_v37 = vpop.f32.mrf.mxu0 }
 0x58c   : > { %v2146_v38 = vpop.f32.mrf.mxu0 }
 0x58e   : > { %v1484_v39 = vpop.f32.mrf.mxu0 }
 0x590   : > { %v2147_v40 = vpop.f32.mrf.mxu0 }
 0x591   : > { %v2020_v40 = vld [vmem:[#allocation16] ss:$0 sm:$0xff] }
 0x5fd   : > { %v1435_v41 = vpop.f32.mrf.mxu1 }
 0x5fe   : > { %v1482_v49 = vadd.f32 %v1481_v37, %v1435_v41 }
 0x5ff   : > { %v2140_v42 = vpop.f32.mrf.mxu1 }
 0x601   : > { %v1438_v43 = vpop.f32.mrf.mxu1 }
 0x603   : > { %v2141_v44 = vpop.f32.mrf.mxu1 }
 0x605   : > { %v1529_v45 = vpop.f32.mrf.mxu1 }
 0x606   : > { %v1535_v50 = vadd.f32 %v1529_v45, %v1482_v49 }
 0x607   : > { %v2152_v46 = vpop.f32.mrf.mxu1 }
 0x609   : > { %v1532_v47 = vpop.f32.mrf.mxu1 }
 0x60b   : > { %v2153_v48 = vpop.f32.mrf.mxu1 }
 0x632   : > { %v1578_v51 = vpop.f32.mrf.mxu0 }
 0x633   : > { %v1584_v54 = vadd.f32 %v1578_v51, %v1535_v50 }
 0x634   : > { %v2158_v55 = vpop.f32.mrf.mxu0 }
 0x635   : > { %v1592_v56 = vadd.f32 %v2008_v52, %v1584_v54 }
 0x636   : > { %v1581_v57 = vpop.f32.mrf.mxu0 }
 0x637   : > { %v1593_v58 = vadd.f32 %v1592_v56, %v2821_v0 }
 0x638   : > { %v2159_v59 = vpop.f32.mrf.mxu0 }
 0x639   : > { %1594 = vst.msk [vmem:[#allocation2] sm:$0xff] %vm703_vm0, %v1593_v58  ;;  %v1597_v53 = vsel %vm703_vm0, %v1593_v58, 0.0  ;;  %v1601_v60 = vmul.f32 %v1593_v58, %v1593_v58 }
 0x63a   : > { %1598 = vadd.xlane.f32.xlu0 %v1597_v53 }
 0x63b   : > { %v1602_v61 = vsel %vm703_vm0, %v1601_v60, 0.0 }
 0x63c   : > { %1603 = vadd.xlane.f32.xlu1 %v1602_v61 }
 0x640   : > { %v1786_v38 = vld [vmem:[#allocation2] sm:$0xff] }
 0x6c3   : > { %v1599_v1 = vpop.xlane.xlu0 %1598 }
 0x6c4   : > { %v1600_v2 = vmul.f32 0.03125, %v1599_v1 }
 0x6c5   : > { %v1604_v3 = vpop.xlane.xlu1 %1603 }
 0x6c6   : > { %v1606_v0 = vmul.f32 %v1600_v2, %v1600_v2  ;;  %v1605_v4 = vmul.f32 0.03125, %v1604_v3  ;;  %v1608_v8 = vsub.f32 %v1593_v58, %v1600_v2 }
 0x6c8   : > { %v1607_v5 = vsub.f32 %v1605_v4, %v1606_v0 }
 0x6ca   : > { %v1609_v7 = vadd.f32 1e-05, %v1607_v5 }
 0x6cc   : > { %2322 = vrsqrt.f32 %v1609_v7 }
 0x6d9   : > { %v2323_v9 = vpop.eup %2322 }
 0x6da   : > { %v1611_v11 = vmul.f32 %v2323_v9, %v1608_v8 }
 0x6dc   : > { %v1618_v13 = vmul.f32 %v2009_v10, %v1611_v11 }
 0x6de   : > { %v1625_v14 = vadd.f32 %v2010_v12, %v1618_v13 }
 0x6e0   : > { %v1626_v15 = vpack.c.bf16 %v1625_v14, %v1625_v14 }
 0x6e2   : > { %1628 = vst.msk [vmem:[#allocation3] sm:$0xf] %vm1627_vm4, %v1626_v15 }
 0x6e9   : > { %v1630_v16 = vld [vmem:[#allocation3] sm:$0xf] }
 0x6ea   : > { %2165 = vmatmul.mubr.msk.bf16.vlgmr.msra.gmra.mxu1 %vm703_vm0, %v1630_v16 }
 0x7aa   : > { %v1692_v22 = vpop.f32.mrf.mxu1 }
 0x7ab   : > { %v1693_v23 = vadd.f32 %v2011_v21, %v1692_v22 }
 0x7ac   : > { %v2166_v24 = vpop.f32.mrf.mxu1 }
 0x7ad   : > { %v1699_v25 = vmul.f32 0.70710677, %v1693_v23  ;;  %v1698_v29 = vmul.f32 0.5, %v1693_v23 }
 0x7ae   : > { %v1695_v26 = vpop.f32.mrf.mxu1 }
 0x7af   : > { %2324 = verf.f32 %v1699_v25 }
 0x7b0   : > { %v2167_v27 = vpop.f32.mrf.mxu1 }
 0x7bc   : > { %v2325_v28 = vpop.eup %2324 }
 0x7bd   : > { %v1701_v30 = vadd.f32 1.0, %v2325_v28 }
 0x7bf   : > { %v1702_v31 = vmul.f32 %v1701_v30, %v1698_v29 }
 0x7c1   : > { %v1704_v6 = vpack.c.bf16 %v1702_v31, %v1702_v31 }
 0x7c3   : > { %2177 = vmatmul.mubr.msk.bf16.vlgmr.msra.gmra.mxu0 %vm1737_vm5, %v1704_v6 }
 0x883   : > { %v1775_v33 = vpop.f32.mrf.mxu0 }
 0x884   : > { %v1781_v34 = vadd.f32 %v1775_v33, %v1703_v32 }
 0x885   : > { %v2178_v35 = vpop.f32.mrf.mxu0 }
 0x886   : > { %1782 = vst.msk [vmem:[#allocation4] sm:$0xff] %vm703_vm0, %v1781_v34 }
 0x887   : > { %v1778_v36 = vpop.f32.mrf.mxu0 }
 0x889   : > { %v2179_v37 = vpop.f32.mrf.mxu0 }
 0x88d   : > { %v1787_v39 = vld [vmem:[#allocation4] sm:$0xff] }
 0x88e   : > { %v1788_v41 = vadd.f32 %v1787_v39, %v1786_v38 }
 0x890   : > { %v1796_v42 = vadd.f32 %v2020_v40, %v1788_v41 }
 0x892   : > { %1797 = vst.msk [vmem:[%s694_s27] sm:$0xff] %vm703_vm0, %v1796_v42 }
 0x893 PF: > { %s3049_s20 = sld [smem:[#allocation23_spill]]  ;;  %s3050_s24 = smov %s2572_s25 }
 0x894   : > { %s3051_s25 = smov %s3053_s1 }
 0x899   : > { %s32_s26 = sadd.s32 1, %s3049_s20  }
 0x89a   : > { %p29_p6 = scmp.ge.s32.totalorder %s32_s26, 4  }
 0x89c   :  { %31 = sbr.rel (!%p29_p6) target bundleno = 11 (0xb), region = 164 }
 0x8a1   :  { %1817 = vsyncpa [#allocation6], 1 }
 0x8a2   :  { %1819 = vsyncpa [#allocation6 + $0x1], 1 }
 0x8a3   :  { %1820 = vsyncpa [#allocation8], 1 }
 0x8a4   :  { %1821 = vsyncpa [#allocation11], 1 }
 0x8a5   :  { %1822 = vsyncpa [#allocation14], 1 }
 0x8a6   :  { %1823 = vsyncpa [#allocation17], 1 }

// kernel: roberta_encoder.3
= control target key start
LH: loop header
LB: loop body
LE: loop exit
PB: predicated region body
PF: predicated region fallthrough
CT: control target
= control target key end

     0   :  { %s2836_s0 = inlined_call_operand.hbm [shape: f32[2,8,32], index: 0, kind: input, shape index: {}, may-alias: {0,19}]   ;;  %s2837_s1 = inlined_call_operand.vmem [shape: f32[1,32], index: 1, kind: input, shape index: {}]   ;;  %s2838_s2 = inlined_call_operand.vmem [shape: f32[1,32], index: 2, kind: input, shape index: {}]   ;;  %s2839_s3 = inlined_call_operand.vmem [shape: bf16[32,32], index: 3, kind: input, shape index: {}]   ;;  %s2840_s4 = inlined_call_operand.vmem [shape: f32[1,32], index: 4, kind: input, shape index: {}]   ;;  %s2841_s5 = inlined_call_operand.vmem [shape: bf16[32,32], index: 5, kind: input, shape index: {}]   ;;  %s2842_s6 = inlined_call_operand.vmem [shape: f32[1,32], index: 6, kind: input, shape index: {}]   ;;  %s2843_s7 = inlined_call_operand.vmem [shape: bf16[32,32], index: 7, kind: input, shape index: {}]   ;;  %s2844_s8 = inlined_call_operand.vmem [shape: f32[1,32], index: 8, kind: input, shape index: {}]   ;;  %s2845_s9 = inlined_call_operand.vmem [shape: bf16[32,32], index: 9, kind: input, shape index: {}]   ;;  %s2846_s10 = inlined_call_operand.vmem [shape: f32[1,32], index: 10, kind: input, shape index: {}]   ;;  %s2847_s11 = inlined_call_operand.vmem [shape: f32[1,32], index: 11, kind: input, shape index: {}]   ;;  %s2848_s12 = inlined_call_operand.vmem [shape: f32[1,32], index: 12, kind: input, shape index: {}]   ;;  %s2849_s13 = inlined_call_operand.vmem [shape: bf16[32,64], index: 13, kind: input, shape index: {}]   ;;  %s2850_s14 = inlined_call_operand.vmem [shape: f32[1,64], index: 14, kind: input, shape index: {}]   ;;  %s2851_s15 = inlined_call_operand.vmem [shape: bf16[64,32], index: 15, kind: input, shape index: {}]   ;;  %s2852_s16 = inlined_call_operand.vmem [shape: f32[1,32], index: 16, kind: input, shape index: {}]   ;;  %s2853_s17 = inlined_call_operand.vmem [shape: f32[1,32], index: 17, kind: input, shape index: {}]   ;;  %s2854_s18 = inlined_call_operand.vmem [shape: f32[1,32], index: 18, kind: input, shape index: {}]   ;;  %s2855_s19 = inlined_call_operand.hbm [shape: f32[2,8,32], index: 19, kind: output, shape index: {}, may-alias: {0,19}]  }
   0x1   :  { %2861 = sst [smem:[#allocation15_spill]] %s2836_s0 }
   0x2   :  { %2862 = sst [smem:[#allocation16_spill]] %s2837_s1 }
   0x3   :  { %2863 = sst [smem:[#allocation17_spill]] %s2838_s2 }
   0x4   :  { %2864 = sst [smem:[#allocation18_spill]] %s2839_s3 }
   0x5   :  { %2865 = sst [smem:[#allocation19_spill]] %s2840_s4 }
   0x6   :  { %2866 = sst [smem:[#allocation20_spill]] %s2841_s5 }
   0x7   :  { %2867 = sst [smem:[#allocation21_spill]] %s2850_s14 }
   0x8   :  { %2868 = sst [smem:[#allocation22_spill]] %s2852_s16 }
   0x9   :  { %2869 = sst [smem:[#allocation23_spill]] %s2853_s17 }
   0xa   :  { %2870 = sst [smem:[#allocation24_spill]] %s2854_s18 }
   0xb   :  { %2871 = sst [smem:[#allocation25_spill]] %s2855_s19 }
   0xc   :  { %24 = vsyncpa [#allocation6], 0 }
   0xd   :  { %26 = vsyncpa [#allocation6 + $0x1], 0 }
   0xe   :  { %27 = vsyncpa [#allocation7], 0 }
   0xf   :  { %29 = vsyncpa [#allocation7 + $0x1], 0  ;;  %s2486_s0 = smov 0   ;;  %s2488_s30 = smov 0  }
  0x10   :  { %s2490_s20 = smov 0   ;;  %s2492_s21 = smov 0  }
  0x11   :  { %s2494_s1 = smov 0   ;;  %s2496_s22 = smov 0  }
  0x12 LB: > { %2872 = sst [smem:[#allocation11_spill]] %s2357_s0  ;;  %s1952_s2 = sadd.s32 4294967295, %s2377_s22   ;;  %s2377_s22 = sphi %s2496_s22, %s35_s22   ;;  %s2373_s1 = sphi %s2494_s1, %s2902_s1   ;;  %s2369_s21 = sphi %s2492_s21, %s2901_s21   ;;  %s2365_s20 = sphi %s2490_s20, %s2900_s20   ;;  %s2361_s30 = sphi %s2488_s30, %s2899_s30   ;;  %s2357_s0 = sphi %s2486_s0, %s2898_s0  }
  0x13   : > { %2873 = sst [smem:[#allocation12_spill]] %s2369_s21  ;;  %s1953_s23 = sadd.s32 4294967294, %s2377_s22  }
  0x14   : > { %s47_s24 = sadd.s32 1, %s2373_s1  ;;  %s54_s25 = sadd.s32 1, %s2365_s20 }
  0x15   : > { %p49_p0 = scmp.ge.s32.totalorder %s47_s24, 2  ;;  %p61_p1 = scmp.ne.s32.totalorder %s2365_s20, %s2361_s30 }
  0x16   : > { %p62_p2 = scmp.eq.s32.totalorder %s2377_s22, 0  ;;  %p67_p3 = scmp.ne.s32.totalorder %s2361_s30, %s2357_s0 }
  0x17   : > { %s2904_s24 = smov (%p49_p0, %s47_s24), 0  ;;  %p68_p5 = scmp.eq.s32.totalorder %s1952_s2, 0 }
  0x18   : > { %2874 = sst [smem:[#allocation13_spill]] %s2904_s24  ;;  %p2527_p4 = por %p62_p2, %p61_p1 }
  0x19   : > { %s51_s26 = ssub.s32 %s2373_s1, %s2904_s24  ;;  %p484_p6 = scmp.eq.s32.totalorder %s1952_s2, 1 }
  0x1a   : > { %p52_p7 = scmp.eq.s32.totalorder %s51_s26, 0  ;;  %p2533_p8 = por %p68_p5, %p67_p3 }
  0x1b   : > { %p2537_p9 = por %p484_p6, %p61_p1  ;;  %p490_p10 = scmp.eq.s32.totalorder %s1953_s23, 1 }
  0x1c   : > { %s2542_s29 = scalar_select %p52_p7, %s2365_s20, %s54_s25  }
  0x1d   : > { %p2544_p11 = por %p490_p10, %p67_p3  ;;  %p2178_p13 = scmp.lt.s32.totalorder %s2377_s22, 2 }
  0x1e   : > { %2878 = sst [smem:[#allocation14_spill]] %s2542_s29  ;;  %s577_s2 = sand.u32 1, %s2365_s20  }
  0x1f   : > { %s2879_s0 = scalar_select %p2544_p11, 1, 0 }
  0x20   : > { %s1959_s26 = sshll.u32 %s577_s2, 3  ;;  %s1960_s24 = sshll.u32 %s2373_s1, 7 }
  0x21   : > { %s2880_s17 = sld [smem:[#allocation15_spill]]  ;;  %s581_s16 = scalar_lea.vmem [#allocation5], %s1959_s26 }
  0x22   : > { %s588_s14 = sshll.u32 %s581_s16, 4  ;;  %p2557_p0 = pnand %p2178_p13, %p2527_p4  ;;  %s589_s14 = int_to_ptr.vmem [resolvable:$true] %s588_s14 }
  0x23   : > { %p1961_p1 = scmp.ge.s32.totalorder %s2377_s22, 1  ;;  %p593_p2 = scmp.lt.s32.totalorder %s2377_s22, 3 }
  0x24   : > { %s578_s25 = scalar_lea.sflag [#allocation6], %s577_s2  ;;  %p2271_p3 = pneg %p2557_p0 }
  0x25   : > { %s2282_s29 = scalar_lea.vmem %s589_s14, 128  ;;  %s2379_s18 = smov [#allocation5]  }
  0x26   : > { %p2283_p5 = scmp.ne.s32.totalorder %s589_s14, %s2282_s29 }
  0x27   : > { %s586_s21 = scalar_lea.hbm %s2880_s17, %s1960_s24  ;;  %s2287_s17 = sshll.u32 %s2379_s18, 4  ;;  %s2288_s17 = int_to_ptr.vmem [resolvable:$false] %s2287_s17 }
  0x28   : > { %p2285_p6 = pnand %p2283_p5, %p2271_p3  ;;  %s2289_s16 = scalar_lea.vmem %s2288_s17, 256 }
  0x29   : > { %p2290_p10 = scmp.lt.s32.totalorder %s589_s14, %s2288_s17  ;;  %p2291_p12 = scmp.lt.s32.totalorder %s2289_s16, %s2282_s29 }
  0x2a   : > { %p2286_p7 = pneg %p2285_p6 }
  0x2b   : > { %p2292_p4 = por %p2291_p12, %p2290_p10 }
  0x2d   : > { %p2293_p13 = pnand %p2292_p4, %p2286_p7 }
  0x2f   : > { %2296 = shalt.err (!%p2293_p13)
}
  0x30   : > { %2173 = dma.hbm_to_vmem [thread:$0]  (!%p2557_p0), %s586_s21, 128, %s589_s14, %s578_s25  }
  0x31   : > { %p594_p11 = pnand %p1961_p1, %p593_p2 }
  0x32   : > { %s2572_s19 = sand.u32 (!%p594_p11), 1, %s2361_s30  }
  0x33   : > { %597 = sbr.rel (%p594_p11) target bundleno = 2296 (0x8f8), region = 96  ;;  %s1962_s24 = sshll.u32 (!%p594_p11), %s2572_s19, 3 }
  0x34   : > { %s600_s3 = scalar_lea.sflag (!%p594_p11), [#allocation6], %s2572_s19  ;;  %s603_s29 = scalar_lea.vmem (!%p594_p11), [#allocation5], %s1962_s24 }
  0x38   : > { %2348 = dma.done.wait (%p2533_p8), %s600_s3, 128  }
  0x39   : > { %2350 = vsyncadd (%p2533_p8), %s600_s3, 4294967168  ;;  %vm691_vm0 = vcmask 261120   ;;  %v2582_v0 = vld [vmem:[%s603_s29] sm:$0xff]  ;;  %s2882_s2 = sld [smem:[#allocation18_spill]]  ;;  %v2234_v5 = vld [vmem:[%s2843_s7 + $0x8] sm:$0xff]   ;;  %v2380_v6 = vmov 0.0  }
  0x3a   : > { %v692_v1 = vsel %vm691_vm0, %v2582_v0, 0.0  ;;  %v697_v2 = vmul.f32 %v2582_v0, %v2582_v0  ;;  %2050 = vmatprep.subr.bf16.mxu1 %v2380_v6  ;;  %1617 = vst.msk [vmem:[#allocation4] sm:$0xff] %vm691_vm0, %v2380_v6  ;;  %2066 = vmatprep.subr.bf16.mxu0 %v2380_v6  ;;  %v2236_v8 = vld [vmem:[%s2843_s7] sm:$0xff]   ;;  %vm2381_vm1 = vmmov 0   ;;  %s2883_s29 = sld [smem:[#allocation16_spill]]  ;;  %vm957_vm2 = vcmask 64512  }
  0x3b   : > { %693 = vadd.xlane.f32.xlu0 %v692_v1  ;;  %2067 = vmatpush3.bf16.msra.mxu0 %v2234_v5  ;;  %s2884_s26 = sld [smem:[#allocation17_spill]]  ;;  %v1970_v34 = vld [vmem:[%s2842_s6] ss:$0 sm:$0xff]  ;;  %s2382_s14 = smov 112   ;;  %vm1197_vm3 = vcmask 1043456   ;;  %vm1615_vm4 = vcmask 257024  }
  0x3c   : > { %v698_v3 = vsel %vm691_vm0, %v697_v2, 0.0  ;;  %2068 = vmatprep.subr.bf16.mxu0 %v2380_v6  ;;  %2054 = vmatprep.mubr.msk.bf16.mxu1 %vm2381_vm1, %v2380_v6  ;;  %s2885_s5 = sld [smem:[#allocation20_spill]]  ;;  %s2383_s21 = smov 120   ;;  %v1974_v51 = vld [vmem:[%s2844_s8] ss:$0 sm:$0xff]  ;;  %vm1725_vm5 = vcmask 523264  }
  0x3d   : > { %2070 = vmatprep.mubr.msk.bf16.mxu0 %vm2381_vm1, %v2380_v6  ;;  %s2886_s4 = sld [smem:[#allocation19_spill]]  ;;  %s1819_s25 = scalar_lea.sflag [#allocation7], %s2572_s19 }
  0x3e   : > { %s2888_s27 = sld [smem:[#allocation22_spill]] }
  0x3f   : > { %699 = vadd.xlane.f32.xlu0 %v698_v3  ;;  %v2233_v4 = vld [vmem:[%s2882_s2 + $0x8] sm:$0xff]   ;;  %v2235_v7 = vld [vmem:[%s2882_s2] sm:$0xff]   ;;  %2069 = vmatpush3.bf16.msra.mxu0 %v2236_v8  ;;  %s2889_s23 = sld [smem:[#allocation12_spill]] }
  0x40   : > { %2051 = vmatpush3.bf16.msra.mxu1 %v2233_v4  ;;  %2080 = vmatprep.subr.bf16.mxu0 %v2380_v6  ;;  %v1964_v18 = vld [vmem:[%s2883_s29] ss:$0 sm:$0xff]  ;;  %s2890_s17 = sld [smem:[#allocation23_spill]] }
  0x41   : > { %2052 = vmatprep.subr.bf16.mxu1 %v2380_v6  ;;  %v1965_v20 = vld [vmem:[%s2884_s26] ss:$0 sm:$0xff]  ;;  %s2384_s26 = smov 104   ;;  %s2891_s29 = sld [smem:[#allocation24_spill]] }
  0x42   : > { %v2237_v23 = vld [vmem:[%s2885_s5 + $0x8] sm:$0xff]   ;;  %v2238_v25 = vld [vmem:[%s2885_s5] sm:$0xff]  }
  0x43   : > { %v1966_v37 = vld [vmem:[%s2886_s4] ss:$0 sm:$0xff]  ;;  %s2892_s4 = sld [smem:[#allocation25_spill]] }
  0x44   : > { %2053 = vmatpush3.bf16.msra.mxu1 %v2235_v7 }
  0x45   : > { %2058 = vmatprep.subr.bf16.mxu1 %v2380_v6 }
  0xc4   : > { %v694_v9 = vpop.xlane.xlu0 %693 }
  0xc5   : > { %v696_v10 = vmul.f32 0.03125, %v694_v9 }
  0xc7   : > { %v702_v12 = vmul.f32 %v696_v10, %v696_v10  ;;  %v704_v16 = vsub.f32 %v2582_v0, %v696_v10 }
  0xc8   : > { %v700_v11 = vpop.xlane.xlu0 %699 }
  0xc9   : > { %v701_v13 = vmul.f32 0.03125, %v700_v11 }
  0xcb   : > { %v703_v14 = vsub.f32 %v701_v13, %v702_v12 }
  0xcd   : > { %v705_v15 = vadd.f32 1e-05, %v703_v14 }
  0xcf   : > { %2245 = vrsqrt.f32 %v705_v15 }
  0xdc   : > { %v2246_v17 = vpop.eup %2245 }
  0xdd   : > { %v707_v19 = vmul.f32 %v2246_v17, %v704_v16 }
  0xdf   : > { %v714_v21 = vmul.f32 %v1964_v18, %v707_v19 }
  0xe1   : > { %v721_v22 = vadd.f32 %v1965_v20, %v714_v21 }
  0xe3   : > { %v722_v24 = vpack.c.bf16 %v721_v22, %v721_v22 }
  0xe5   : > { %2055 = vmatmul.mubr.msk.bf16.vlgmr.msra.gmra.mxu1 %vm691_vm0, %v722_v24  ;;  %2071 = vmatmul.mubr.msk.bf16.vlgmr.msra.gmra.mxu0 %vm691_vm0, %v722_v24 }
  0xe6   : > { %2059 = vmatpush3.bf16.msra.mxu1 %v2237_v23  ;;  %2062 = vmatprep.mubr.msk.bf16.mxu1 %vm2381_vm1, %v2380_v6 }
  0xe7   : > { %2060 = vmatprep.subr.bf16.mxu1 %v2380_v6  ;;  %2082 = vmatprep.mubr.msk.bf16.mxu0 %vm2381_vm1, %v2380_v6 }
  0xea   : > { %2061 = vmatpush3.bf16.msra.mxu1 %v2238_v25 }
  0xeb   : > { %2074 = vmatprep.subr.bf16.mxu1 %v2380_v6 }
  0xed   : > { %2063 = vmatmul.mubr.msk.bf16.vlgmr.msra.gmra.mxu1 %vm691_vm0, %v722_v24 }
  0xee   : > { %2076 = vmatprep.mubr.msk.bf16.mxu1 %vm2381_vm1, %v2380_v6 }
 0x1a5   : > { %v783_v26 = vpop.f32.mrf.mxu1  ;;  %v909_v27 = vpop.f32.mrf.mxu0 }
 0x1a6   : > { %v784_v41 = vadd.f32 %v1966_v37, %v783_v26  ;;  %v2661_v53 = vadd.f32 %v1974_v51, %v909_v27 }
 0x1a7   : > { %v2056_v28 = vpop.f32.mrf.mxu1  ;;  %v2072_v29 = vpop.f32.mrf.mxu0 }
 0x1a8   : > { %v925_v44 = vpack.c.bf16 %v784_v41, %v784_v41  ;;  %v953_v58 = vpack.c.bf16 %v2661_v53, %v2661_v53 }
 0x1a9   : > { %v786_v30 = vpop.f32.mrf.mxu1  ;;  %v912_v31 = vpop.f32.mrf.mxu0 }
 0x1aa   : > { %v1199_v61 = vsel %vm1197_vm3, %v953_v58, 0 }
 0x1ab   : > { %v2057_v32 = vpop.f32.mrf.mxu1  ;;  %v2073_v33 = vpop.f32.mrf.mxu0 }
 0x1ad   : > { %v846_v35 = vpop.f32.mrf.mxu1 }
 0x1ae   : > { %v847_v36 = vadd.f32 %v1970_v34, %v846_v35 }
 0x1af   : > { %v2064_v38 = vpop.f32.mrf.mxu1 }
 0x1b0   : > { %933 = vrot.lane.b32.xlu0 %v847_v36, %s2382_s14  ;;  %930 = vrot.lane.b32.xlu1 %v847_v36, %s2383_s21  ;;  %v939_v39 = vpack.c.bf16 %v847_v36, %v847_v36 }
 0x1b1   : > { %v849_v40 = vpop.f32.mrf.mxu1 }
 0x1b2   : > { %v962_v42 = vsel %vm957_vm2, %v939_v39, 0 }
 0x1b3   : > { %v2065_v43 = vpop.f32.mrf.mxu1  ;;  %2075 = vmatpush3.bf16.xpose.msra.mxu1 %v962_v42 }
 0x1b4   : > { %916 = vrot.lane.b32.xlu1 %v784_v41, %s2383_s21  ;;  %2086 = vmatprep.subr.bf16.mxu1 %v2380_v6 }
 0x1b8   : > { %936 = vrot.lane.b32.xlu1 %v847_v36, %s2384_s26 }
 0x1ba   : > { %2077 = vmatmul.mubr.msk.bf16.vlgmr.msra.gmra.mxu1 %vm957_vm2, %v925_v44 }
 0x1bb   : > { %2088 = vmatprep.mubr.msk.bf16.mxu1 %vm2381_vm1, %v2380_v6 }
 0x1bc   : > { %919 = vrot.lane.b32.xlu1 %v784_v41, %s2382_s14 }
 0x1c0   : > { %922 = vrot.lane.b32.xlu1 %v784_v41, %s2384_s26 }
 0x222   : > { %v934_v45 = vpop.permute.xlu0 %933  ;;  %v931_v46 = vpop.permute.xlu1 %930 }
 0x223   : > { %v941_v47 = vpack.c.bf16 %v934_v45, %v934_v45  ;;  %v940_v48 = vpack.c.bf16 %v931_v46, %v931_v46 }
 0x225   : > { %v1054_v49 = vsel %vm957_vm2, %v941_v47, 0  ;;  %v1008_v50 = vsel %vm957_vm2, %v940_v48, 0 }
 0x226   : > { %2081 = vmatpush3.bf16.xpose.msra.mxu0 %v1008_v50  ;;  %v917_v52 = vpop.permute.xlu1 %916  ;;  %2087 = vmatpush3.bf16.xpose.msra.mxu1 %v1054_v49 }
 0x227   : > { %2092 = vmatprep.subr.bf16.mxu0 %v2380_v6  ;;  %2098 = vmatprep.subr.bf16.mxu1 %v2380_v6  ;;  %v926_v55 = vpack.c.bf16 %v917_v52, %v917_v52 }
 0x22a   : > { %v937_v54 = vpop.permute.xlu1 %936 }
 0x22b   : > { %v942_v56 = vpack.c.bf16 %v937_v54, %v937_v54 }
 0x22d   : > { %v1100_v57 = vsel %vm957_vm2, %v942_v56, 0  ;;  %2083 = vmatmul.mubr.msk.bf16.vlgmr.msra.gmra.mxu0 %vm957_vm2, %v926_v55 }
 0x22e   : > { %2093 = vmatpush3.bf16.xpose.msra.mxu0 %v1100_v57  ;;  %v920_v59 = vpop.permute.xlu1 %919  ;;  %2094 = vmatprep.mubr.msk.bf16.mxu0 %vm2381_vm1, %v2380_v6 }
 0x22f   : > { %v927_v60 = vpack.c.bf16 %v920_v59, %v920_v59  ;;  %2104 = vmatprep.subr.bf16.mxu0 %v2380_v6 }
 0x231   : > { %2089 = vmatmul.mubr.msk.bf16.vlgmr.msra.gmra.mxu1 %vm957_vm2, %v927_v60 }
 0x232   : > { %2099 = vmatpush3.bf16.msra.mxu1 %v1199_v61  ;;  %v923_v62 = vpop.permute.xlu1 %922  ;;  %2100 = vmatprep.mubr.msk.bf16.mxu1 %vm2381_vm1, %v2380_v6 }
 0x233   : > { %v928_v63 = vpack.c.bf16 %v923_v62, %v923_v62  ;;  %2110 = vmatprep.subr.bf16.mxu1 %v2380_v6 }
 0x235   : > { %2095 = vmatmul.mubr.msk.bf16.vlgmr.msra.gmra.mxu0 %vm957_vm2, %v928_v63 }
 0x236   : > { %2106 = vmatprep.mubr.msk.bf16.mxu0 %vm2381_vm1, %v2380_v6 }
 0x27a   : > { %v998_v1 = vpop.f32.mrf.mxu1 }
 0x27b   : > { %v1142_v2 = vmul.f32 0.35355338, %v998_v1 }
 0x27c   : > { %v2078_v3 = vpop.f32.mrf.mxu1 }
 0x27d   : > { %v1146_v4 = vsel %vm957_vm2, %v1142_v2, -inf }
 0x27e   : > { %1147 = vmax.xlane.f32.xlu1 %v1146_v4  ;;  %v1001_v5 = vpop.f32.mrf.mxu1 }
 0x280   : > { %v2079_v7 = vpop.f32.mrf.mxu1 }
 0x281   : > { %v1380_v7 = vld [vmem:[%s2845_s9] sm:$0xf] }
 0x2ed   : > { %v1044_v8 = vpop.f32.mrf.mxu0 }
 0x2ee   : > { %v1143_v9 = vmul.f32 0.35355338, %v1044_v8 }
 0x2ef   : > { %v2084_v10 = vpop.f32.mrf.mxu0 }
 0x2f0   : > { %v1149_v11 = vsel %vm957_vm2, %v1143_v9, -inf  ;;  %v1433_v10 = vsel %vm1197_vm3, %v1380_v7, 0 }
 0x2f1   : > { %1150 = vmax.xlane.f32.xlu0 %v1149_v11  ;;  %v1047_v12 = vpop.f32.mrf.mxu0  ;;  %v1090_v13 = vpop.f32.mrf.mxu1  ;;  %v1382_v11 = vld [vmem:[%s2845_s9 + $0x4] sm:$0xf] }
 0x2f2   : > { %v1144_v14 = vmul.f32 0.35355338, %v1090_v13  ;;  %v1387_v12 = vsel %vm1197_vm3, %v1382_v11, 0  ;;  %v1525_v13 = vld [vmem:[%s2845_s9 + $0xc] sm:$0xf] }
 0x2f3   : > { %v2085_v15 = vpop.f32.mrf.mxu0  ;;  %v2090_v16 = vpop.f32.mrf.mxu1 }
 0x2f4   : > { %v1152_v17 = vsel %vm957_vm2, %v1144_v14, -inf  ;;  %v1530_v16 = vsel %vm1197_vm3, %v1525_v13, 0 }
 0x2f5   : > { %v1136_v18 = vpop.f32.mrf.mxu0  ;;  %1153 = vmax.xlane.f32.xlu1 %v1152_v17  ;;  %v1093_v19 = vpop.f32.mrf.mxu1 }
 0x2f6   : > { %v1145_v20 = vmul.f32 0.35355338, %v1136_v18 }
 0x2f7   : > { %v2091_v21 = vpop.f32.mrf.mxu1  ;;  %v2096_v22 = vpop.f32.mrf.mxu0 }
 0x2f8   : > { %v1155_v23 = vsel %vm957_vm2, %v1145_v20, -inf }
 0x2f9   : > { %v1139_v24 = vpop.f32.mrf.mxu0  ;;  %1156 = vmax.xlane.f32.xlu1 %v1155_v23 }
 0x2fb   : > { %v2097_v25 = vpop.f32.mrf.mxu0 }
 0x307   : > { %v1148_v26 = vpop.xlane.xlu1 %1147 }
 0x308   : > { %v1158_v27 = vsub.f32 %v1142_v2, %v1148_v26 }
 0x30a   : > { %v1162_v28 = vmul.f32 1.442695, %v1158_v27 }
 0x30c   : > { %2247 = vpow2.f32 %v1162_v28 }
 0x319   : > { %v2248_v29 = vpop.eup %2247 }
 0x31a   : > { %v1170_v30 = vsel %vm957_vm2, %v2248_v29, 0.0 }
 0x31b   : > { %1171 = vadd.xlane.f32.xlu0 %v1170_v30 }
 0x37a   : > { %v1151_v31 = vpop.xlane.xlu0 %1150 }
 0x37b   : > { %v1159_v32 = vsub.f32 %v1143_v9, %v1151_v31 }
 0x37d   : > { %v1164_v33 = vmul.f32 1.442695, %v1159_v32 }
 0x37e   : > { %v1154_v34 = vpop.xlane.xlu1 %1153 }
 0x37f   : > { %2249 = vpow2.f32 %v1164_v33  ;;  %v1160_v35 = vsub.f32 %v1144_v14, %v1154_v34 }
 0x381   : > { %v1166_v36 = vmul.f32 1.442695, %v1160_v35 }
 0x382   : > { %v1157_v42 = vpop.xlane.xlu1 %1156 }
 0x383   : > { %2251 = vpow2.f32 %v1166_v36  ;;  %v1161_v43 = vsub.f32 %v1145_v20, %v1157_v42  ;;  %v1476_v20 = vld [vmem:[%s2845_s9 + $0x8] sm:$0xf] }
 0x384   : > { %v1481_v23 = vsel %vm1197_vm3, %v1476_v20, 0  ;;  %v2244_v20 = vld [vmem:[%s2851_s15] sm:$0xff]  }
 0x385   : > { %v1168_v44 = vmul.f32 1.442695, %v1161_v43 }
 0x38c   : > { %v2250_v37 = vpop.eup %2249 }
 0x38d   : > { %v1173_v38 = vsel %vm957_vm2, %v2250_v37, 0.0 }
 0x38e   : > { %1174 = vadd.xlane.f32.xlu1 %v1173_v38 }
 0x390   : > { %v2252_v39 = vpop.eup %2251 }
 0x391   : > { %v1176_v40 = vsel %vm957_vm2, %v2252_v39, 0.0 }
 0x392   : > { %1177 = vadd.xlane.f32.xlu0 %v1176_v40 }
 0x39f   : > { %947 = vrot.lane.b32.xlu1 %v2661_v53, %s2382_s14  ;;  %s2887_s14 = sld [smem:[#allocation21_spill]] }
 0x3a4   : > { %v1172_v41 = vpop.xlane.xlu0 %1171 }
 0x3a5   : > { %2253 = vrcp.f32 %v1172_v41 }
 0x3a6   : > { %2255 = vpow2.f32 %v1168_v44 }
 0x3a8   : > { %944 = vrot.lane.b32.xlu0 %v2661_v53, %s2383_s21  ;;  %s669_s21 = scalar_lea.vmem [#allocation8], %s1962_s24 }
 0x3b2   : > { %v2254_v45 = vpop.eup %2253 }
 0x3b3   : > { %v1186_v46 = vmul.f32 %v2254_v45, %v2248_v29  ;;  %v2256_v48 = vpop.eup %2255 }
 0x3b4   : > { %v1179_v49 = vsel %vm957_vm2, %v2256_v48, 0.0 }
 0x3b5   : > { %v1190_v47 = vpack.c.bf16 %v1186_v46, %v1186_v46 }
 0x3b7   : > { %2101 = vmatmul.mubr.msk.bf16.vlgmr.msra.gmra.mxu1 %vm957_vm2, %v1190_v47 }
 0x3b8   : > { %2112 = vmatprep.mubr.msk.bf16.mxu1 %vm2381_vm1, %v2380_v6 }
 0x3c3   : > { %1180 = vadd.xlane.f32.xlu1 %v1179_v49 }
 0x3d4   : > { %950 = vrot.lane.b32.xlu1 %v2661_v53, %s2384_s26  ;;  %s1832_s26 = sshll.u32 %s669_s21, 4  ;;  %s1833_s26 = int_to_ptr.vmem [resolvable:$true] %s1832_s26 }
 0x3d5   : > { %s2297_s18 = scalar_lea.vmem %s1833_s26, 128 }
 0x3d6   : > { %p2298_p8 = scmp.ne.s32.totalorder %s1833_s26, %s2297_s18 }
 0x3d8   : > { %p2299_p11 = pnand %p2298_p8, %p2537_p9 }
 0x3da   : > { %p2300_p12 = pneg %p2299_p11 }
 0x417   : > { %v1175_v50 = vpop.xlane.xlu1 %1174 }
 0x418   : > { %2257 = vrcp.f32 %v1175_v50 }
 0x41b   : > { %v1178_v51 = vpop.xlane.xlu0 %1177  ;;  %v948_v52 = vpop.permute.xlu1 %947 }
 0x41c   : > { %2259 = vrcp.f32 %v1178_v51  ;;  %v955_v54 = vpack.c.bf16 %v948_v52, %v948_v52  ;;  %v1990_v52 = vld [vmem:[%s2846_s10] ss:$0 sm:$0xff] }
 0x41e   : > { %v1291_v55 = vsel %vm1197_vm3, %v955_v54, 0 }
 0x41f   : > { %v945_v56 = vpop.permute.xlu0 %944  ;;  %2111 = vmatpush3.bf16.msra.mxu1 %v1291_v55 }
 0x420   : > { %v954_v57 = vpack.c.bf16 %v945_v56, %v945_v56  ;;  %2122 = vmatprep.subr.bf16.mxu1 %v2380_v6 }
 0x422   : > { %v1245_v58 = vsel %vm1197_vm3, %v954_v57, 0 }
 0x423   : > { %2105 = vmatpush3.bf16.msra.mxu0 %v1245_v58 }
 0x424   : > { %2116 = vmatprep.subr.bf16.mxu0 %v2380_v6 }
 0x425   : > { %v2258_v59 = vpop.eup %2257 }
 0x426   : > { %v1187_v53 = vmul.f32 %v2258_v59, %v2250_v37 }
 0x428   : > { %v1191_v60 = vpack.c.bf16 %v1187_v53, %v1187_v53 }
 0x429   : > { %v2260_v61 = vpop.eup %2259 }
 0x42a   : > { %2107 = vmatmul.mubr.msk.bf16.vlgmr.msra.gmra.mxu0 %vm957_vm2, %v1191_v60  ;;  %v1188_v62 = vmul.f32 %v2260_v61, %v2252_v39 }
 0x42b   : > { %2118 = vmatprep.mubr.msk.bf16.mxu0 %vm2381_vm1, %v2380_v6 }
 0x42c   : > { %v1192_v63 = vpack.c.bf16 %v1188_v62, %v1188_v62  ;;  %v2239_v62 = vld [vmem:[%s2849_s13 + $0x8] sm:$0xff]  }
 0x42e   : > { %2113 = vmatmul.mubr.msk.bf16.vlgmr.msra.gmra.mxu1 %vm957_vm2, %v1192_v63  ;;  %v2240_v63 = vld [vmem:[%s2849_s13] sm:$0xff]  }
 0x42f   : > { %2124 = vmatprep.mubr.msk.bf16.mxu1 %vm2381_vm1, %v2380_v6  ;;  %2123 = vmatpush3.bf16.msra.mxu1 %v1387_v12  ;;  %v1992_v12 = vld [vmem:[%s2848_s12] ss:$0 sm:$0xff] }
 0x430   : > { %2134 = vmatprep.subr.bf16.mxu1 %v2380_v6 }
 0x44c   : > { %v1181_v1 = vpop.xlane.xlu1 %1180 }
 0x44d   : > { %2261 = vrcp.f32 %v1181_v1 }
 0x450   : > { %v951_v2 = vpop.permute.xlu1 %950 }
 0x451   : > { %v956_v3 = vpack.c.bf16 %v951_v2, %v951_v2 }
 0x453   : > { %v1337_v4 = vsel %vm1197_vm3, %v956_v3, 0 }
 0x454   : > { %2117 = vmatpush3.bf16.msra.mxu0 %v1337_v4 }
 0x455   : > { %2128 = vmatprep.subr.bf16.mxu0 %v2380_v6 }
 0x45a   : > { %v2262_v5 = vpop.eup %2261 }
 0x45b   : > { %v1189_v8 = vmul.f32 %v2262_v5, %v2256_v48 }
 0x45d   : > { %v1193_v9 = vpack.c.bf16 %v1189_v8, %v1189_v8 }
 0x45f   : > { %2119 = vmatmul.mubr.msk.bf16.vlgmr.msra.gmra.mxu0 %vm957_vm2, %v1193_v9 }
 0x460   : > { %2129 = vmatpush3.bf16.msra.mxu0 %v1433_v10  ;;  %2130 = vmatprep.mubr.msk.bf16.mxu0 %vm2381_vm1, %v2380_v6  ;;  %v1991_v10 = vld [vmem:[%s2847_s11] ss:$0 sm:$0xff] }
 0x461   : > { %2140 = vmatprep.subr.bf16.mxu0 %v2380_v6 }
 0x477   : > { %v1235_v14 = vpop.f32.mrf.mxu1 }
 0x478   : > { %v1379_v15 = vpack.c.bf16 %v1235_v14, %v1235_v14 }
 0x479   : > { %v2102_v17 = vpop.f32.mrf.mxu1 }
 0x47a   : > { %2131 = vmatmul.mubr.msk.bf16.vlgmr.msra.gmra.mxu0 %vm957_vm2, %v1379_v15  ;;  %v2241_v17 = vld [vmem:[%s2851_s15 + $0x18] sm:$0xff]  }
 0x47b   : > { %v1238_v18 = vpop.f32.mrf.mxu1  ;;  %2141 = vmatpush3.bf16.msra.mxu0 %v1530_v16  ;;  %2142 = vmatprep.mubr.msk.bf16.mxu0 %vm2381_vm1, %v2380_v6 }
 0x47c   : > { %2154 = vmatprep.subr.bf16.mxu0 %v2380_v6  ;;  %v2242_v18 = vld [vmem:[%s2851_s15 + $0x10] sm:$0xff]  }
 0x47d   : > { %v2103_v19 = vpop.f32.mrf.mxu1 }
 0x47e   : > { %v2243_v19 = vld [vmem:[%s2851_s15 + $0x8] sm:$0xff]  }
 0x4ea   : > { %v1281_v21 = vpop.f32.mrf.mxu0 }
 0x4eb   : > { %v1381_v22 = vpack.c.bf16 %v1281_v21, %v1281_v21  ;;  %v1993_v21 = vld [vmem:[%s2887_s14] ss:$0 sm:$0xff]  ;;  %s2006_s14 = sshll.u32 %s2889_s23, 7 }
 0x4ec   : > { %v2108_v24 = vpop.f32.mrf.mxu0  ;;  %s1830_s5 = scalar_lea.hbm %s2892_s4, %s2006_s14 }
 0x4ed   : > { %2125 = vmatmul.mubr.msk.bf16.vlgmr.msra.gmra.mxu1 %vm957_vm2, %v1381_v22 }
 0x4ee   : > { %v1284_v25 = vpop.f32.mrf.mxu0  ;;  %v1327_v26 = vpop.f32.mrf.mxu1  ;;  %2135 = vmatpush3.bf16.msra.mxu1 %v1481_v23  ;;  %2136 = vmatprep.mubr.msk.bf16.mxu1 %vm2381_vm1, %v2380_v6 }
 0x4ef   : > { %2146 = vmatprep.subr.bf16.mxu1 %v2380_v6  ;;  %v1475_v30 = vpack.c.bf16 %v1327_v26, %v1327_v26 }
 0x4f0   : > { %v2109_v27 = vpop.f32.mrf.mxu0  ;;  %v2114_v28 = vpop.f32.mrf.mxu1 }
 0x4f2   : > { %v1330_v29 = vpop.f32.mrf.mxu1 }
 0x4f4   : > { %v2115_v31 = vpop.f32.mrf.mxu1 }
 0x4f5   : > { %2137 = vmatmul.mubr.msk.bf16.vlgmr.msra.gmra.mxu1 %vm957_vm2, %v1475_v30 }
 0x4f6   : > { %2150 = vmatprep.mubr.msk.bf16.mxu1 %vm2381_vm1, %v2380_v6  ;;  %2147 = vmatpush3.bf16.msra.mxu1 %v2239_v62 }
 0x4f7   : > { %2148 = vmatprep.subr.bf16.mxu1 %v2380_v6 }
 0x4fa   : > { %2149 = vmatpush3.bf16.msra.mxu1 %v2240_v63 }
 0x51f   : > { %v1373_v32 = vpop.f32.mrf.mxu0 }
 0x520   : > { %v1524_v33 = vpack.c.bf16 %v1373_v32, %v1373_v32  ;;  %v1691_v32 = vld [vmem:[#allocation4] sm:$0xff] }
 0x521   : > { %v2120_v34 = vpop.f32.mrf.mxu0 }
 0x522   : > { %2143 = vmatmul.mubr.msk.bf16.vlgmr.msra.gmra.mxu0 %vm957_vm2, %v1524_v33 }
 0x523   : > { %v1376_v35 = vpop.f32.mrf.mxu0  ;;  %2162 = vmatprep.mubr.msk.bf16.mxu0 %vm2381_vm1, %v2380_v6  ;;  %2155 = vmatpush3.bf16.msra.mxu0 %v2241_v17 }
 0x524   : > { %2156 = vmatprep.subr.bf16.mxu0 %v2380_v6 }
 0x525   : > { %v2121_v36 = vpop.f32.mrf.mxu0 }
 0x527   : > { %2157 = vmatpush3.bf16.msra.mxu0 %v2242_v18 }
 0x528   : > { %2158 = vmatprep.subr.bf16.mxu0 %v2380_v6 }
 0x52b   : > { %2159 = vmatpush3.bf16.msra.mxu0 %v2243_v19 }
 0x52c   : > { %2160 = vmatprep.subr.bf16.mxu0 %v2380_v6 }
 0x52f   : > { %2161 = vmatpush3.bf16.msra.mxu0 %v2244_v20 }
 0x53a   : > { %v1469_v37 = vpop.f32.mrf.mxu0 }
 0x53c   : > { %v2132_v38 = vpop.f32.mrf.mxu0 }
 0x53e   : > { %v1472_v39 = vpop.f32.mrf.mxu0 }
 0x540   : > { %v2133_v40 = vpop.f32.mrf.mxu0 }
 0x541   : > { %v2002_v40 = vld [vmem:[%s2888_s27] ss:$0 sm:$0xff] }
 0x5ad   : > { %v1423_v41 = vpop.f32.mrf.mxu1 }
 0x5ae   : > { %v1470_v49 = vadd.f32 %v1469_v37, %v1423_v41 }
 0x5af   : > { %v2126_v42 = vpop.f32.mrf.mxu1 }
 0x5b1   : > { %v1426_v43 = vpop.f32.mrf.mxu1 }
 0x5b3   : > { %v2127_v44 = vpop.f32.mrf.mxu1 }
 0x5b5   : > { %v1517_v45 = vpop.f32.mrf.mxu1 }
 0x5b6   : > { %v1523_v50 = vadd.f32 %v1517_v45, %v1470_v49 }
 0x5b7   : > { %v2138_v46 = vpop.f32.mrf.mxu1 }
 0x5b9   : > { %v1520_v47 = vpop.f32.mrf.mxu1 }
 0x5bb   : > { %v2139_v48 = vpop.f32.mrf.mxu1 }
 0x5e2   : > { %v1566_v51 = vpop.f32.mrf.mxu0 }
 0x5e3   : > { %v1572_v54 = vadd.f32 %v1566_v51, %v1523_v50 }
 0x5e4   : > { %v2144_v55 = vpop.f32.mrf.mxu0 }
 0x5e5   : > { %v1580_v56 = vadd.f32 %v1990_v52, %v1572_v54 }
 0x5e6   : > { %v1569_v57 = vpop.f32.mrf.mxu0 }
 0x5e7   : > { %v1581_v58 = vadd.f32 %v1580_v56, %v2582_v0  ;;  %v2003_v56 = vld [vmem:[%s2890_s17] ss:$0 sm:$0xff]  ;;  %s2385_s17 = smov [#allocation8]  }
 0x5e8   : > { %v2145_v59 = vpop.f32.mrf.mxu0  ;;  %s2301_s23 = sshll.u32 %s2385_s17, 4  ;;  %s2302_s23 = int_to_ptr.vmem [resolvable:$false] %s2301_s23 }
 0x5e9   : > { %1582 = vst.msk [vmem:[#allocation2] sm:$0xff] %vm691_vm0, %v1581_v58  ;;  %v1585_v53 = vsel %vm691_vm0, %v1581_v58, 0.0  ;;  %v1589_v60 = vmul.f32 %v1581_v58, %v1581_v58  ;;  %s2303_s24 = scalar_lea.vmem %s2302_s23, 256  ;;  %p2304_p0 = scmp.lt.s32.totalorder %s1833_s26, %s2302_s23 }
 0x5ea   : > { %1586 = vadd.xlane.f32.xlu0 %v1585_v53  ;;  %p2305_p1 = scmp.lt.s32.totalorder %s2303_s24, %s2297_s18 }
 0x5eb   : > { %v1590_v61 = vsel %vm691_vm0, %v1589_v60, 0.0 }
 0x5ec   : > { %1591 = vadd.xlane.f32.xlu1 %v1590_v61  ;;  %p2306_p2 = por %p2305_p1, %p2304_p0 }
 0x5ee   : > { %p2307_p3 = pnand %p2306_p2, %p2300_p12 }
 0x5f0   : > { %v1774_v38 = vld [vmem:[#allocation2] sm:$0xff] }
 0x673   : > { %v1587_v0 = vpop.xlane.xlu0 %1586 }
 0x674   : > { %v1588_v1 = vmul.f32 0.03125, %v1587_v0 }
 0x675   : > { %v1592_v2 = vpop.xlane.xlu1 %1591 }
 0x676   : > { %v1594_v3 = vmul.f32 %v1588_v1, %v1588_v1  ;;  %v1593_v4 = vmul.f32 0.03125, %v1592_v2  ;;  %v1596_v8 = vsub.f32 %v1581_v58, %v1588_v1  ;;  %v2004_v58 = vld [vmem:[%s2891_s29] ss:$0 sm:$0xff] }
 0x678   : > { %v1595_v5 = vsub.f32 %v1593_v4, %v1594_v3 }
 0x67a   : > { %v1597_v7 = vadd.f32 1e-05, %v1595_v5 }
 0x67c   : > { %2263 = vrsqrt.f32 %v1597_v7 }
 0x689   : > { %v2264_v9 = vpop.eup %2263 }
 0x68a   : > { %v1599_v11 = vmul.f32 %v2264_v9, %v1596_v8 }
 0x68c   : > { %v1606_v13 = vmul.f32 %v1991_v10, %v1599_v11 }
 0x68e   : > { %v1613_v14 = vadd.f32 %v1992_v12, %v1606_v13 }
 0x690   : > { %v1614_v15 = vpack.c.bf16 %v1613_v14, %v1613_v14 }
 0x692   : > { %1616 = vst.msk [vmem:[#allocation3] sm:$0xf] %vm1615_vm4, %v1614_v15 }
 0x699   : > { %v1618_v16 = vld [vmem:[#allocation3] sm:$0xf] }
 0x69a   : > { %2151 = vmatmul.mubr.msk.bf16.vlgmr.msra.gmra.mxu1 %vm691_vm0, %v1618_v16 }
 0x75a   : > { %v1680_v22 = vpop.f32.mrf.mxu1 }
 0x75b   : > { %v1681_v23 = vadd.f32 %v1993_v21, %v1680_v22 }
 0x75c   : > { %v2152_v24 = vpop.f32.mrf.mxu1 }
 0x75d   : > { %v1687_v25 = vmul.f32 0.70710677, %v1681_v23  ;;  %v1686_v29 = vmul.f32 0.5, %v1681_v23 }
 0x75e   : > { %v1683_v26 = vpop.f32.mrf.mxu1 }
 0x75f   : > { %2265 = verf.f32 %v1687_v25 }
 0x760   : > { %v2153_v27 = vpop.f32.mrf.mxu1 }
 0x76c   : > { %v2266_v28 = vpop.eup %2265 }
 0x76d   : > { %v1689_v30 = vadd.f32 1.0, %v2266_v28 }
 0x76f   : > { %v1690_v6 = vmul.f32 %v1689_v30, %v1686_v29 }
 0x771   : > { %v1692_v31 = vpack.c.bf16 %v1690_v6, %v1690_v6 }
 0x773   : > { %2163 = vmatmul.mubr.msk.bf16.vlgmr.msra.gmra.mxu0 %vm1725_vm5, %v1692_v31 }
 0x833   : > { %v1763_v33 = vpop.f32.mrf.mxu0 }
 0x834   : > { %v1769_v34 = vadd.f32 %v1763_v33, %v1691_v32 }
 0x835   : > { %v2164_v35 = vpop.f32.mrf.mxu0 }
 0x836   : > { %1770 = vst.msk [vmem:[#allocation4] sm:$0xff] %vm691_vm0, %v1769_v34 }
 0x837   : > { %v1766_v36 = vpop.f32.mrf.mxu0 }
 0x839   : > { %v2165_v37 = vpop.f32.mrf.mxu0 }
 0x83d   : > { %v1775_v39 = vld [vmem:[#allocation4] sm:$0xff] }
 0x83e   : > { %v1776_v41 = vadd.f32 %v1775_v39, %v1774_v38 }
 0x840   : > { %v1784_v42 = vadd.f32 %v2002_v40, %v1776_v41 }
 0x842   : > { %v1787_v43 = vsel %vm691_vm0, %v1784_v42, 0.0  ;;  %v1792_v44 = vmul.f32 %v1784_v42, %v1784_v42 }
 0x843   : > { %1788 = vadd.xlane.f32.xlu0 %v1787_v43 }
 0x844   : > { %v1793_v45 = vsel %vm691_vm0, %v1792_v44, 0.0 }
 0x847   : > { %1794 = vadd.xlane.f32.xlu0 %v1793_v45 }
 0x8cc   : > { %v1789_v46 = vpop.xlane.xlu0 %1788 }
 0x8cd   : > { %v1791_v47 = vmul.f32 0.03125, %v1789_v46 }
 0x8cf   : > { %v1797_v49 = vmul.f32 %v1791_v47, %v1791_v47  ;;  %v1799_v54 = vsub.f32 %v1784_v42, %v1791_v47 }
 0x8d0   : > { %v1795_v48 = vpop.xlane.xlu0 %1794 }
 0x8d1   : > { %v1796_v50 = vmul.f32 0.03125, %v1795_v48 }
 0x8d3   : > { %v1798_v51 = vsub.f32 %v1796_v50, %v1797_v49 }
 0x8d5   : > { %v1800_v52 = vadd.f32 1e-05, %v1798_v51 }
 0x8d7   : > { %2267 = vrsqrt.f32 %v1800_v52 }
 0x8e4   : > { %v2268_v55 = vpop.eup %2267 }
 0x8e5   : > { %v1802_v57 = vmul.f32 %v2268_v55, %v1799_v54 }
 0x8e7   : > { %v1809_v59 = vmul.f32 %v2003_v56, %v1802_v57 }
 0x8e9   : > { %v1816_v53 = vadd.f32 %v2004_v58, %v1809_v59 }
 0x8eb   : > { %1817 = vst.msk [vmem:[%s669_s21] sm:$0xff] %vm691_vm0, %v1816_v53 }
 0x8ec   : > { %2310 = shalt.err (!%p2307_p3)
}
 0x8ed   : > { %s2311_s2 = scalar_lea.hbm %s1830_s5, 128  ;;  %s2315_s3 = scalar_lea.hbm %s2892_s4, 256 }
 0x8ee   : > { %p2312_p5 = scmp.ne.s32.totalorder %s1830_s5, %s2311_s2  ;;  %p2316_p10 = scmp.lt.s32.totalorder %s1830_s5, %s2892_s4 }
 0x8ef   : > { %p2317_p4 = scmp.lt.s32.totalorder %s2315_s3, %s2311_s2 }
 0x8f0   : > { %p2313_p6 = pnand %p2312_p5, %p2537_p9 }
 0x8f1   : > { %p2318_p13 = por %p2317_p4, %p2316_p10 }
 0x8f2   : > { %p2314_p7 = pneg %p2313_p6 }
 0x8f4   : > { %p2319_p8 = pnand %p2318_p13, %p2314_p7 }
 0x8f6   : > { %2322 = shalt.err (!%p2319_p8)
}
 0x8f7   : > { %2168 = dma.vmem_to_hbm [thread:$0]  (%p2537_p9), %s1833_s26, 128, %s1830_s5, %s1819_s25  }
 0x8f8 PF: > { %s2893_s21 = sld [smem:[#allocation11_spill]]  ;;  %p2894_p11 = scmp.ne.s32.totalorder %s2879_s0, 0 }
 0x8f9   : > { %p2895_p12 = scmp.ge.s32.totalorder %s2377_s22, 2 }
 0x8fb   : > { %p2175_p0 = pnand %p2895_p12, %p2894_p11 }
 0x8fd   : > { %p2176_p1 = pneg %p2175_p0 }
 0x8fe   : > { %s1844_s27 = sand.u32 1, %s2893_s21  }
 0x8ff   : > { %s1845_s18 = scalar_lea.sflag [#allocation7], %s1844_s27 }
 0x900   : > { %2352 = dma.done.wait (%p2176_p1), %s1845_s18, 128  }
 0x901   : > { %2354 = vsyncadd (%p2176_p1), %s1845_s18, 4294967168  ;;  %s35_s22 = sadd.s32 1, %s2377_s22   ;;  %s2896_s17 = sld [smem:[#allocation14_spill]] }
 0x902   : > { %p32_p2 = scmp.ge.s32.totalorder %s35_s22, 4   ;;  %s2897_s5 = sld [smem:[#allocation13_spill]] }
 0x903   : > { %s2898_s0 = smov %s2361_s30  ;;  %s2899_s30 = smov %s2365_s20 }
 0x904   : > { %s2901_s21 = smov %s2373_s1  ;;  %34 = sbr.rel (!%p32_p2) target bundleno = 18 (0x12), region = 158 }
 0x907   : > { %s2900_s20 = smov %s2896_s17 }
 0x908   : > { %s2902_s1 = smov %s2897_s5 }
 0x909   :  { %1850 = vsyncpa [#allocation6], 1 }
 0x90a   :  { %1852 = vsyncpa [#allocation6 + $0x1], 1 }
 0x90b   :  { %1853 = vsyncpa [#allocation7], 1 }
 0x90c   :  { %1855 = vsyncpa [#allocation7 + $0x1], 1 }

</bundles_post_ra>
